<compile_context>
chip_gen: v7x
topology: tpu7x:2x2x1
jax: 0.10.0
libtpu: 0.0.40
codegen_flags: <defaults>
</compile_context>

<pallas_src>
import functools

import jax
import jax.numpy as jnp
from jax import lax
from jax.experimental import pallas as pl
from jax.experimental.pallas import tpu as pltpu

LN_EPS = 1e-5        # torch.nn.LayerNorm default
NEG_INF = -1e9       # additive mask value (kept on the f32 score path)


def _layer_norm(x, gamma, beta):
    # x: (S, E) f32; gamma/beta: (1, E) f32
    mu = jnp.mean(x, axis=-1, keepdims=True)
    var = jnp.mean(jnp.square(x - mu), axis=-1, keepdims=True)
    return (x - mu) * lax.rsqrt(var + LN_EPS) * gamma + beta


def decoder_layer_kernel(num_heads, head_dim,
                         slopes_ref, x_ref,
                         ln1g_ref, ln1b_ref,
                         wq_ref, bq_ref, wk_ref, bk_ref, wv_ref, bv_ref,
                         wo_ref, bo_ref,
                         ln2g_ref, ln2b_ref,
                         w1_ref, b1_ref, w2_ref, b2_ref,
                         o_ref,
                         ctx_ref, h2_ref, g_ref, acc_ref):
    D = head_dim
    md = wq_ref.dtype                      # matmul compute dtype (bf16)
    f_idx = pl.program_id(1)

    # ---------------- attention block: only on the first FFN-tile step -------
    @pl.when(f_idx == 0)
    def _attention():
        x = x_ref[0]                       # (S, E) f32 for this batch element
        S = x.shape[0]

        h = _layer_norm(x, ln1g_ref[...], ln1b_ref[...])   # do_layer_norm_before
        h_c = h.astype(md)

        # Wide-N fused QKV projections: full E output columns fill the MXU;
        # per-head slices below are static and D-aligned (cheap).
        q = jnp.dot(h_c, wq_ref[...], preferred_element_type=jnp.float32) + bq_ref[...]
        k = jnp.dot(h_c, wk_ref[...], preferred_element_type=jnp.float32) + bk_ref[...]
        v = jnp.dot(h_c, wv_ref[...], preferred_element_type=jnp.float32) + bv_ref[...]

        # ALiBi relative positions with the causal mask folded in (one (S,S)
        # f32 tensor shared by all heads, built in-kernel -> zero HBM traffic).
        row = lax.broadcasted_iota(jnp.int32, (S, S), 0)
        col = lax.broadcasted_iota(jnp.int32, (S, S), 1)
        rel_causal = jnp.where(col > row, jnp.float32(NEG_INF),
                               (col - row).astype(jnp.float32))

        # TODO(synk): flash-style online-softmax KV tiling + a parallel seq-tile
        # grid axis for S >= 512; the full (S,S) score tile per head is only
        # appropriate for short sequences.
        for hd in range(num_heads):
            sl = slice(hd * D, (hd + 1) * D)
            q_h = q[:, sl].astype(md)
            k_h = k[:, sl].astype(md)
            v_h = v[:, sl].astype(md)

            scores = lax.dot_general(q_h, k_h, (((1,), (1,)), ((), ())),
                                     preferred_element_type=jnp.float32)  # (S,S)
            scores = scores + slopes_ref[hd] * rel_causal     # ALiBi + causal

            m = jnp.max(scores, axis=-1, keepdims=True)
            e = jnp.exp(scores - m)
            inv_l = pl.reciprocal(jnp.sum(e, axis=-1, keepdims=True), approx=True)
            # Normalize the (S,D) context instead of the (S,S) probabilities.
            ctx_ref[:, sl] = (jnp.dot(e.astype(md), v_h,
                                      preferred_element_type=jnp.float32) * inv_l)

        # Single fused output projection with full K=E contraction.
        attn_out = (jnp.dot(ctx_ref[...].astype(md), wo_ref[...],
                            preferred_element_type=jnp.float32) + bo_ref[...])
        h2 = x + attn_out                                  # residual (dropout=id)
        h2_ref[...] = h2
        g_ref[...] = _layer_norm(h2, ln2g_ref[...], ln2b_ref[...]).astype(md)
        acc_ref[...] = jnp.zeros_like(acc_ref)

    # ---------------- feed-forward: F-tiled accumulation, every step ---------
    fchunk = (jnp.dot(g_ref[...], w1_ref[...], preferred_element_type=jnp.float32)
              + b1_ref[...])
    fchunk = jnp.maximum(fchunk, 0.0)                      # OPT default: relu
    acc_ref[...] += jnp.dot(fchunk.astype(md), w2_ref[...],
                            preferred_element_type=jnp.float32)

    @pl.when(f_idx == pl.num_programs(1) - 1)
    def _finalize():
        o_ref[0] = (h2_ref[...] + acc_ref[...] + b2_ref[...]).astype(o_ref.dtype)


def prepare_params(params, num_heads, matmul_dtype=jnp.bfloat16):
    """One-time host-side weight prep (scale fold + bf16 casts).

    Call once and cache/reuse the result across layer invocations; do NOT
    re-run this in the per-step path.
    """
    E = params["wq"].shape[0]
    assert E % num_heads == 0
    scaling = (E // num_heads) ** -0.5
    md = matmul_dtype
    p = dict(params)
    p["wq"] = (params["wq"] * scaling).astype(md)   # fold 1/sqrt(D) into q proj
    p["bq"] = params["bq"] * scaling                # biases stay f32
    p["wk"] = params["wk"].astype(md)
    p["wv"] = params["wv"].astype(md)
    p["wo"] = params["wo"].astype(md)
    p["w1"] = params["w1"].astype(md)
    p["w2"] = params["w2"].astype(md)
    return p


def _pick_f_tile(F, target=2048):
    """Largest 128-multiple divisor of F not exceeding `target` (or F itself)."""
    if F <= target:
        return F
    t = (target // 128) * 128
    while t >= 128:
        if F % t == 0:
            return t
        t -= 128
    return F


def _vmem_limit_bytes():
    cap = 128 * 1024 * 1024
    try:
        info = pltpu.get_tpu_info()
        cap = int(getattr(info, "vmem_capacity_bytes", cap)) or cap
    except Exception:
        pass
    # ~12.5% headroom for Mosaic internal scratch / semaphores / streamed bufs:
    # -> ~56 MiB on v7x (64 MiB VMEM), ~112 MiB on v5e/v6e (128 MiB VMEM).
    return min((cap * 7) // 8, 112 * 1024 * 1024)


def opt_alibi_decoder_layer(x, prepped, slopes, num_heads):
    B, S, E = x.shape
    F = prepped["w1"].shape[1]
    assert E % num_heads == 0
    D = E // num_heads
    md = prepped["wq"].dtype

    f_tile = _pick_f_tile(F)
    nf = F // f_tile

    kernel = functools.partial(decoder_layer_kernel, num_heads, D)

    def const_spec(shape):
        # Constant-index blocks are revisited every grid step: single-buffer
        # them to halve resident weight VMEM (default double-buffering buys
        # nothing for a block that never changes).
        n = len(shape)
        index_map = lambda b, f, _n=n: (0,) * _n
        try:
            return pl.BlockSpec(shape, index_map, pipeline_mode=pl.Buffered(1))
        except Exception:  # older JAX without pipeline_mode support
            return pl.BlockSpec(shape, index_map)

    in_specs = [
        pl.BlockSpec(memory_space=pltpu.MemorySpace.SMEM),       # ALiBi slopes
        pl.BlockSpec((1, S, E), lambda b, f: (b, 0, 0)),         # x (streamed)
        const_spec((1, E)), const_spec((1, E)),                  # ln1 gamma/beta
        const_spec((E, E)), const_spec((1, E)),                  # wq, bq
        const_spec((E, E)), const_spec((1, E)),                  # wk, bk
        const_spec((E, E)), const_spec((1, E)),                  # wv, bv
        const_spec((E, E)), const_spec((1, E)),                  # wo, bo
        const_spec((1, E)), const_spec((1, E)),                  # ln2 gamma/beta
        pl.BlockSpec((E, f_tile), lambda b, f: (0, f)),          # fc1 w (F-tiled)
        pl.BlockSpec((1, f_tile), lambda b, f: (0, f)),          # fc1 b (F-tiled)
        pl.BlockSpec((f_tile, E), lambda b, f: (f, 0)),          # fc2 w (F-tiled)
        const_spec((1, E)),                                      # fc2 b
    ]
    out_specs = pl.BlockSpec((1, S, E), lambda b, f: (b, 0, 0))

    scratch_shapes = [
        pltpu.VMEM((S, E), jnp.float32),   # per-head context assembly
        pltpu.VMEM((S, E), jnp.float32),   # h2 (post-attention residual)
        pltpu.VMEM((S, E), md),            # LN2 output (FFN matmul input)
        pltpu.VMEM((S, E), jnp.float32),   # FFN accumulator
    ]

    # TODO(synk): accept/emit bf16 activations (stream x/out in bf16) when the
    # surrounding layers consume bf16; kept f32 here for tight reference parity.
    return pl.pallas_call(
        kernel,
        grid=(B, nf),
        in_specs=in_specs,
        out_specs=out_specs,
        out_shape=jax.ShapeDtypeStruct((B, S, E), jnp.float32),
        scratch_shapes=scratch_shapes,
        compiler_params=pltpu.CompilerParams(
            dimension_semantics=("parallel", "arbitrary"),
            vmem_limit_bytes=_vmem_limit_bytes()),
    )(slopes, x,
      prepped["ln1_g"], prepped["ln1_b"],
      prepped["wq"], prepped["bq"], prepped["wk"], prepped["bk"],
      prepped["wv"], prepped["bv"],
      prepped["wo"], prepped["bo"],
      prepped["ln2_g"], prepped["ln2_b"],
      prepped["w1"], prepped["b1"], prepped["w2"], prepped["b2"])


def reference_decoder_layer(x, params, slopes, num_heads):
    """Pure-JAX f32 reference mirroring the PyTorch forward (eval mode)."""
    B, S, E = x.shape
    D = E // num_heads
    scaling = D ** -0.5

    def ln(v, g, b):
        mu = v.mean(-1, keepdims=True)
        var = ((v - mu) ** 2).mean(-1, keepdims=True)
        return (v - mu) / jnp.sqrt(var + LN_EPS) * g + b

    pos = jnp.arange(S)
    rel = (pos[None, :] - pos[:, None]).astype(jnp.float32)
    alibi = slopes[:, None, None] * rel                              # (H, S, S)
    causal = jnp.where(pos[None, :] > pos[:, None],
                       jnp.float32(NEG_INF), jnp.float32(0.0))       # (S, S)

    residual = x
    h = ln(x, params["ln1_g"], params["ln1_b"])
    q = (h @ params["wq"] + params["bq"]) * scaling
    k = h @ params["wk"] + params["bk"]
    v = h @ params["wv"] + params["bv"]
    q = q.reshape(B, S, num_heads, D).transpose(0, 2, 1, 3)
    k = k.reshape(B, S, num_heads, D).transpose(0, 2, 1, 3)
    v = v.reshape(B, S, num_heads, D).transpose(0, 2, 1, 3)
    scores = jnp.einsum("bhqd,bhkd->bhqk", q, k) + alibi[None] + causal[None, None]
    p = jax.nn.softmax(scores, axis=-1)
    ctx = jnp.einsum("bhqk,bhkd->bhqd", p, v).transpose(0, 2, 1, 3).reshape(B, S, E)
    attn_out = ctx @ params["wo"] + params["bo"]
    h2 = residual + attn_out
    g2 = ln(h2, params["ln2_g"], params["ln2_b"])
    f = jnp.maximum(g2 @ params["w1"] + params["b1"], 0.0)
    f = f @ params["w2"] + params["b2"]
    return h2 + f


def make_params(key, E, F):
    ks = jax.random.split(key, 8)
    scale = 0.02
    return {
        "ln1_g": jnp.ones((1, E), jnp.float32),
        "ln1_b": jnp.zeros((1, E), jnp.float32),
        "ln2_g": jnp.ones((1, E), jnp.float32),
        "ln2_b": jnp.zeros((1, E), jnp.float32),
        # (in, out) layout == PyTorch weight.T
        "wq": scale * jax.random.normal(ks[0], (E, E), jnp.float32),
        "wk": scale * jax.random.normal(ks[1], (E, E), jnp.float32),
        "wv": scale * jax.random.normal(ks[2], (E, E), jnp.float32),
        "wo": scale * jax.random.normal(ks[3], (E, E), jnp.float32),
        "w1": scale * jax.random.normal(ks[4], (E, F), jnp.float32),
        "w2": scale * jax.random.normal(ks[5], (F, E), jnp.float32),
        "bq": scale * jax.random.normal(ks[6], (1, E), jnp.float32),
        "bk": jnp.zeros((1, E), jnp.float32),
        "bv": scale * jax.random.normal(ks[7], (1, E), jnp.float32),
        "bo": jnp.zeros((1, E), jnp.float32),
        "b1": jnp.zeros((1, F), jnp.float32),
        "b2": jnp.zeros((1, E), jnp.float32),
    }


def make_alibi_slopes(H):
    # standard ALiBi slopes for power-of-two head counts
    return 2.0 ** (-8.0 * (jnp.arange(1, H + 1, dtype=jnp.float32) / H))


if __name__ == "__main__":
    B, S, E, H, F = 2, 8, 32, 4, 128   # batch, seq, hidden, heads, ffn_dim

    key = jax.random.PRNGKey(0)
    kx, kp = jax.random.split(key)
    x = jax.random.normal(kx, (B, S, E), jnp.float32)
    params = make_params(kp, E, F)
    slopes = make_alibi_slopes(H)

    # Host-side weight prep done ONCE (scale fold + bf16 casts), reused per call.
    prepped = prepare_params(params, H)

    out = opt_alibi_decoder_layer(x, prepped, slopes, H)
    out = jax.block_until_ready(out)

    ref = reference_decoder_layer(x, params, slopes, H)
    assert out.shape == (B, S, E)
    # bf16 matmul inputs with f32 accumulation -> mixed-precision tolerance.
    max_diff = jnp.max(jnp.abs(out - ref))
    assert jnp.allclose(out, ref, rtol=2e-2, atol=2e-2), (
        f"max abs diff = {max_diff}")

    # TODO(synk): output_attentions / use_cache (present_key_value) paths and
    # arbitrary (non-causal) attention_mask / layer_head_mask tensors are not
    # produced; only the hidden_states output of the layer is returned.
    print("KERNEL_OK")
</pallas_src>

<mosaic_0001>
module attributes {stable_mosaic.version = 11 : i64} {
  func.func @decoder_layer_kernel(%arg0: i32, %arg1: i32, %arg2: memref<4xf32, #tpu.memory_space<smem>>, %arg3: memref<1x8x32xf32, #tpu.memory_space<vmem>>, %arg4: memref<1x32xf32, #tpu.memory_space<vmem>>, %arg5: memref<1x32xf32, #tpu.memory_space<vmem>>, %arg6: memref<32x32xbf16, #tpu.memory_space<vmem>>, %arg7: memref<1x32xf32, #tpu.memory_space<vmem>>, %arg8: memref<32x32xbf16, #tpu.memory_space<vmem>>, %arg9: memref<1x32xf32, #tpu.memory_space<vmem>>, %arg10: memref<32x32xbf16, #tpu.memory_space<vmem>>, %arg11: memref<1x32xf32, #tpu.memory_space<vmem>>, %arg12: memref<32x32xbf16, #tpu.memory_space<vmem>>, %arg13: memref<1x32xf32, #tpu.memory_space<vmem>>, %arg14: memref<1x32xf32, #tpu.memory_space<vmem>>, %arg15: memref<1x32xf32, #tpu.memory_space<vmem>>, %arg16: memref<32x128xbf16, #tpu.memory_space<vmem>>, %arg17: memref<1x128xf32, #tpu.memory_space<vmem>>, %arg18: memref<128x32xbf16, #tpu.memory_space<vmem>>, %arg19: memref<1x32xf32, #tpu.memory_space<vmem>>, %arg20: memref<1x8x32xf32, #tpu.memory_space<vmem>>, %arg21: memref<8x32xf32, #tpu.memory_space<vmem>>, %arg22: memref<8x32xf32, #tpu.memory_space<vmem>>, %arg23: memref<8x32xbf16, #tpu.memory_space<vmem>>, %arg24: memref<8x32xf32, #tpu.memory_space<vmem>>) attributes {dimension_semantics = [#tpu.dimension_semantics<parallel>, #tpu.dimension_semantics<arbitrary>], iteration_bounds = array<i64: 2, 1>, scalar_prefetch = 0 : i64, scratch_operands = 4 : i64, tpu.core_type = #tpu.core_type<tc>, window_params = [{transform_indices = @transform_0, window_bounds = array<i64: 4>}, {transform_indices = @transform_1, window_bounds = array<i64: 1, 8, 32>}, {pipeline_mode = #tpu.pipeline_mode<synchronous>, transform_indices = @transform_2, window_bounds = array<i64: 1, 32>}, {pipeline_mode = #tpu.pipeline_mode<synchronous>, transform_indices = @transform_3, window_bounds = array<i64: 1, 32>}, {pipeline_mode = #tpu.pipeline_mode<synchronous>, transform_indices = @transform_4, window_bounds = array<i64: 32, 32>}, {pipeline_mode = #tpu.pipeline_mode<synchronous>, transform_indices = @transform_5, window_bounds = array<i64: 1, 32>}, {pipeline_mode = #tpu.pipeline_mode<synchronous>, transform_indices = @transform_6, window_bounds = array<i64: 32, 32>}, {pipeline_mode = #tpu.pipeline_mode<synchronous>, transform_indices = @transform_7, window_bounds = array<i64: 1, 32>}, {pipeline_mode = #tpu.pipeline_mode<synchronous>, transform_indices = @transform_8, window_bounds = array<i64: 32, 32>}, {pipeline_mode = #tpu.pipeline_mode<synchronous>, transform_indices = @transform_9, window_bounds = array<i64: 1, 32>}, {pipeline_mode = #tpu.pipeline_mode<synchronous>, transform_indices = @transform_10, window_bounds = array<i64: 32, 32>}, {pipeline_mode = #tpu.pipeline_mode<synchronous>, transform_indices = @transform_11, window_bounds = array<i64: 1, 32>}, {pipeline_mode = #tpu.pipeline_mode<synchronous>, transform_indices = @transform_12, window_bounds = array<i64: 1, 32>}, {pipeline_mode = #tpu.pipeline_mode<synchronous>, transform_indices = @transform_13, window_bounds = array<i64: 1, 32>}, {transform_indices = @transform_14, window_bounds = array<i64: 32, 128>}, {transform_indices = @transform_15, window_bounds = array<i64: 1, 128>}, {transform_indices = @transform_16, window_bounds = array<i64: 128, 32>}, {pipeline_mode = #tpu.pipeline_mode<synchronous>, transform_indices = @transform_17, window_bounds = array<i64: 1, 32>}, {transform_indices = @transform_18, window_bounds = array<i64: 1, 8, 32>}]} {
    %c0_i32 = arith.constant 0 : i32
    %0 = arith.cmpi eq, %arg1, %c0_i32 : i32
    %1 = arith.extui %0 : i1 to i32
    %c0_i32_0 = arith.constant 0 : i32
    %2 = arith.cmpi ne, %1, %c0_i32_0 : i32
    scf.if %2 {
      %c0_16 = arith.constant 0 : index
      %c0_17 = arith.constant 0 : index
      %c0_18 = arith.constant 0 : index
      %20 = vector.load %arg3[%c0_16, %c0_17, %c0_18] : memref<1x8x32xf32, #tpu.memory_space<vmem>>, vector<1x8x32xf32>
      %21 = vector.shape_cast %20 : vector<1x8x32xf32> to vector<8x32xf32>
      %c0_19 = arith.constant 0 : index
      %c0_20 = arith.constant 0 : index
      %22 = vector.load %arg4[%c0_19, %c0_20] : memref<1x32xf32, #tpu.memory_space<vmem>>, vector<1x32xf32>
      %c0_21 = arith.constant 0 : index
      %c0_22 = arith.constant 0 : index
      %23 = vector.load %arg5[%c0_21, %c0_22] : memref<1x32xf32, #tpu.memory_space<vmem>>, vector<1x32xf32>
      %cst_23 = arith.constant dense<0.000000e+00> : vector<8xf32>
      %24 = vector.multi_reduction <add>, %21, %cst_23 [1] : vector<8x32xf32> to vector<8xf32>
      %25 = vector.shape_cast %24 : vector<8xf32> to vector<8x1xf32>
      %cst_24 = arith.constant 3.200000e+01 : f32
      %26 = vector.broadcast %cst_24 : f32 to vector<8x1xf32>
      %27 = arith.divf %25, %26 : vector<8x1xf32>
      %28 = vector.broadcast %27 : vector<8x1xf32> to vector<8x32xf32>
      %29 = arith.subf %21, %28 : vector<8x32xf32>
      %30 = arith.mulf %29, %29 : vector<8x32xf32>
      %cst_25 = arith.constant dense<0.000000e+00> : vector<8xf32>
      %31 = vector.multi_reduction <add>, %30, %cst_25 [1] : vector<8x32xf32> to vector<8xf32>
      %32 = vector.shape_cast %31 : vector<8xf32> to vector<8x1xf32>
      %cst_26 = arith.constant 3.200000e+01 : f32
      %33 = vector.broadcast %cst_26 : f32 to vector<8x1xf32>
      %34 = arith.divf %32, %33 : vector<8x1xf32>
      %35 = vector.broadcast %27 : vector<8x1xf32> to vector<8x32xf32>
      %36 = arith.subf %21, %35 : vector<8x32xf32>
      %cst_27 = arith.constant 9.99999974E-6 : f32
      %37 = vector.broadcast %cst_27 : f32 to vector<8x1xf32>
      %38 = arith.addf %34, %37 : vector<8x1xf32>
      %39 = math.rsqrt %38 : vector<8x1xf32>
      %40 = vector.broadcast %39 : vector<8x1xf32> to vector<8x32xf32>
      %41 = arith.mulf %36, %40 : vector<8x32xf32>
      %42 = vector.broadcast %22 : vector<1x32xf32> to vector<8x32xf32>
      %43 = arith.mulf %41, %42 : vector<8x32xf32>
      %44 = vector.broadcast %23 : vector<1x32xf32> to vector<8x32xf32>
      %45 = arith.addf %43, %44 : vector<8x32xf32>
      %46 = arith.truncf %45 : vector<8x32xf32> to vector<8x32xbf16>
      %c0_28 = arith.constant 0 : index
      %c0_29 = arith.constant 0 : index
      %47 = vector.load %arg6[%c0_28, %c0_29] : memref<32x32xbf16, #tpu.memory_space<vmem>>, vector<32x32xbf16>
      %cst_30 = arith.constant dense<0.000000e+00> : vector<8x32xf32>
      %48 = tpu.matmul %46, %47, %cst_30 {dimension_numbers = #tpu.dot_dimension_numbers<[1], [0], [0], [1], [0, 0, 1, 1], [], []>} : vector<8x32xbf16>, vector<32x32xbf16>, vector<8x32xf32> -> vector<8x32xf32>
      %c0_31 = arith.constant 0 : index
      %c0_32 = arith.constant 0 : index
      %49 = vector.load %arg7[%c0_31, %c0_32] : memref<1x32xf32, #tpu.memory_space<vmem>>, vector<1x32xf32>
      %50 = vector.broadcast %49 : vector<1x32xf32> to vector<8x32xf32>
      %51 = arith.addf %48, %50 : vector<8x32xf32>
      %c0_33 = arith.constant 0 : index
      %c0_34 = arith.constant 0 : index
      %52 = vector.load %arg8[%c0_33, %c0_34] : memref<32x32xbf16, #tpu.memory_space<vmem>>, vector<32x32xbf16>
      %cst_35 = arith.constant dense<0.000000e+00> : vector<8x32xf32>
      %53 = tpu.matmul %46, %52, %cst_35 {dimension_numbers = #tpu.dot_dimension_numbers<[1], [0], [0], [1], [0, 0, 1, 1], [], []>} : vector<8x32xbf16>, vector<32x32xbf16>, vector<8x32xf32> -> vector<8x32xf32>
      %c0_36 = arith.constant 0 : index
      %c0_37 = arith.constant 0 : index
      %54 = vector.load %arg9[%c0_36, %c0_37] : memref<1x32xf32, #tpu.memory_space<vmem>>, vector<1x32xf32>
      %55 = vector.broadcast %54 : vector<1x32xf32> to vector<8x32xf32>
      %56 = arith.addf %53, %55 : vector<8x32xf32>
      %c0_38 = arith.constant 0 : index
      %c0_39 = arith.constant 0 : index
      %57 = vector.load %arg10[%c0_38, %c0_39] : memref<32x32xbf16, #tpu.memory_space<vmem>>, vector<32x32xbf16>
      %cst_40 = arith.constant dense<0.000000e+00> : vector<8x32xf32>
      %58 = tpu.matmul %46, %57, %cst_40 {dimension_numbers = #tpu.dot_dimension_numbers<[1], [0], [0], [1], [0, 0, 1, 1], [], []>} : vector<8x32xbf16>, vector<32x32xbf16>, vector<8x32xf32> -> vector<8x32xf32>
      %c0_41 = arith.constant 0 : index
      %c0_42 = arith.constant 0 : index
      %59 = vector.load %arg11[%c0_41, %c0_42] : memref<1x32xf32, #tpu.memory_space<vmem>>, vector<1x32xf32>
      %60 = vector.broadcast %59 : vector<1x32xf32> to vector<8x32xf32>
      %61 = arith.addf %58, %60 : vector<8x32xf32>
      %62 = tpu.iota {dimensions = array<i32: 0>} : vector<8x8xi32>
      %63 = tpu.iota {dimensions = array<i32: 1>} : vector<8x8xi32>
      %64 = arith.cmpi sgt, %63, %62 : vector<8x8xi32>
      %65 = arith.subi %63, %62 : vector<8x8xi32>
      %66 = arith.sitofp %65 : vector<8x8xi32> to vector<8x8xf32>
      %cst_43 = arith.constant -1.000000e+09 : f32
      %67 = vector.broadcast %cst_43 : f32 to vector<8x8xf32>
      %68 = arith.select %64, %67, %66 : vector<8x8xi1>, vector<8x8xf32>
      %69 = vector.extract_strided_slice %51 {offsets = [0, 0], sizes = [8, 8], strides = [1, 1]} : vector<8x32xf32> to vector<8x8xf32>
      %70 = arith.truncf %69 : vector<8x8xf32> to vector<8x8xbf16>
      %71 = vector.extract_strided_slice %56 {offsets = [0, 0], sizes = [8, 8], strides = [1, 1]} : vector<8x32xf32> to vector<8x8xf32>
      %72 = arith.truncf %71 : vector<8x8xf32> to vector<8x8xbf16>
      %73 = vector.extract_strided_slice %61 {offsets = [0, 0], sizes = [8, 8], strides = [1, 1]} : vector<8x32xf32> to vector<8x8xf32>
      %74 = arith.truncf %73 : vector<8x8xf32> to vector<8x8xbf16>
      %cst_44 = arith.constant dense<0.000000e+00> : vector<8x8xf32>
      %75 = tpu.matmul %70, %72, %cst_44 {dimension_numbers = #tpu.dot_dimension_numbers<[1], [1], [0], [0], [0, 0, 1, 0], [], []>} : vector<8x8xbf16>, vector<8x8xbf16>, vector<8x8xf32> -> vector<8x8xf32>
      %c0_45 = arith.constant 0 : index
      %76 = memref.load %arg2[%c0_45] : memref<4xf32, #tpu.memory_space<smem>>
      %77 = vector.broadcast %76 : f32 to vector<8x8xf32>
      %78 = arith.mulf %77, %68 : vector<8x8xf32>
      %79 = arith.addf %75, %78 : vector<8x8xf32>
      %cst_46 = arith.constant dense<0xFF800000> : vector<8xf32>
      %80 = vector.multi_reduction <maximumf>, %79, %cst_46 [1] : vector<8x8xf32> to vector<8xf32>
      %81 = vector.shape_cast %80 : vector<8xf32> to vector<8x1xf32>
      %82 = vector.broadcast %81 : vector<8x1xf32> to vector<8x8xf32>
      %83 = arith.subf %79, %82 : vector<8x8xf32>
      %84 = math.exp %83 : vector<8x8xf32>
      %cst_47 = arith.constant dense<0.000000e+00> : vector<8xf32>
      %85 = vector.multi_reduction <add>, %84, %cst_47 [1] : vector<8x8xf32> to vector<8xf32>
      %86 = vector.shape_cast %85 : vector<8xf32> to vector<8x1xf32>
      %87 = tpu.reciprocal %86 {approx = true} : vector<8x1xf32> -> vector<8x1xf32>
      %88 = arith.truncf %84 : vector<8x8xf32> to vector<8x8xbf16>
      %cst_48 = arith.constant dense<0.000000e+00> : vector<8x8xf32>
      %89 = tpu.matmul %88, %74, %cst_48 {dimension_numbers = #tpu.dot_dimension_numbers<[1], [0], [0], [1], [0, 0, 1, 1], [], []>} : vector<8x8xbf16>, vector<8x8xbf16>, vector<8x8xf32> -> vector<8x8xf32>
      %90 = vector.broadcast %87 : vector<8x1xf32> to vector<8x8xf32>
      %91 = arith.mulf %89, %90 : vector<8x8xf32>
      %c0_49 = arith.constant 0 : index
      %c0_50 = arith.constant 0 : index
      %92 = vector.load %arg21[%c0_49, %c0_50] : memref<8x32xf32, #tpu.memory_space<vmem>>, vector<8x8xf32>
      tpu.vector_store %arg21[%c0_49, %c0_50], %91 {strides = array<i32>} : memref<8x32xf32, #tpu.memory_space<vmem>>, vector<8x8xf32>,
      %93 = vector.extract_strided_slice %51 {offsets = [0, 8], sizes = [8, 8], strides = [1, 1]} : vector<8x32xf32> to vector<8x8xf32>
      %94 = arith.truncf %93 : vector<8x8xf32> to vector<8x8xbf16>
      %95 = vector.extract_strided_slice %56 {offsets = [0, 8], sizes = [8, 8], strides = [1, 1]} : vector<8x32xf32> to vector<8x8xf32>
      %96 = arith.truncf %95 : vector<8x8xf32> to vector<8x8xbf16>
      %97 = vector.extract_strided_slice %61 {offsets = [0, 8], sizes = [8, 8], strides = [1, 1]} : vector<8x32xf32> to vector<8x8xf32>
      %98 = arith.truncf %97 : vector<8x8xf32> to vector<8x8xbf16>
      %cst_51 = arith.constant dense<0.000000e+00> : vector<8x8xf32>
      %99 = tpu.matmul %94, %96, %cst_51 {dimension_numbers = #tpu.dot_dimension_numbers<[1], [1], [0], [0], [0, 0, 1, 0], [], []>} : vector<8x8xbf16>, vector<8x8xbf16>, vector<8x8xf32> -> vector<8x8xf32>
      %c1 = arith.constant 1 : index
      %100 = memref.load %arg2[%c1] : memref<4xf32, #tpu.memory_space<smem>>
      %101 = vector.broadcast %100 : f32 to vector<8x8xf32>
      %102 = arith.mulf %101, %68 : vector<8x8xf32>
      %103 = arith.addf %99, %102 : vector<8x8xf32>
      %cst_52 = arith.constant dense<0xFF800000> : vector<8xf32>
      %104 = vector.multi_reduction <maximumf>, %103, %cst_52 [1] : vector<8x8xf32> to vector<8xf32>
      %105 = vector.shape_cast %104 : vector<8xf32> to vector<8x1xf32>
      %106 = vector.broadcast %105 : vector<8x1xf32> to vector<8x8xf32>
      %107 = arith.subf %103, %106 : vector<8x8xf32>
      %108 = math.exp %107 : vector<8x8xf32>
      %cst_53 = arith.constant dense<0.000000e+00> : vector<8xf32>
      %109 = vector.multi_reduction <add>, %108, %cst_53 [1] : vector<8x8xf32> to vector<8xf32>
      %110 = vector.shape_cast %109 : vector<8xf32> to vector<8x1xf32>
      %111 = tpu.reciprocal %110 {approx = true} : vector<8x1xf32> -> vector<8x1xf32>
      %112 = arith.truncf %108 : vector<8x8xf32> to vector<8x8xbf16>
      %cst_54 = arith.constant dense<0.000000e+00> : vector<8x8xf32>
      %113 = tpu.matmul %112, %98, %cst_54 {dimension_numbers = #tpu.dot_dimension_numbers<[1], [0], [0], [1], [0, 0, 1, 1], [], []>} : vector<8x8xbf16>, vector<8x8xbf16>, vector<8x8xf32> -> vector<8x8xf32>
      %114 = vector.broadcast %111 : vector<8x1xf32> to vector<8x8xf32>
      %115 = arith.mulf %113, %114 : vector<8x8xf32>
      %c0_55 = arith.constant 0 : index
      %c8 = arith.constant 8 : index
      %116 = vector.load %arg21[%c0_55, %c8] : memref<8x32xf32, #tpu.memory_space<vmem>>, vector<8x8xf32>
      tpu.vector_store %arg21[%c0_55, %c8], %115 {strides = array<i32>} : memref<8x32xf32, #tpu.memory_space<vmem>>, vector<8x8xf32>,
      %117 = vector.extract_strided_slice %51 {offsets = [0, 16], sizes = [8, 8], strides = [1, 1]} : vector<8x32xf32> to vector<8x8xf32>
      %118 = arith.truncf %117 : vector<8x8xf32> to vector<8x8xbf16>
      %119 = vector.extract_strided_slice %56 {offsets = [0, 16], sizes = [8, 8], strides = [1, 1]} : vector<8x32xf32> to vector<8x8xf32>
      %120 = arith.truncf %119 : vector<8x8xf32> to vector<8x8xbf16>
      %121 = vector.extract_strided_slice %61 {offsets = [0, 16], sizes = [8, 8], strides = [1, 1]} : vector<8x32xf32> to vector<8x8xf32>
      %122 = arith.truncf %121 : vector<8x8xf32> to vector<8x8xbf16>
      %cst_56 = arith.constant dense<0.000000e+00> : vector<8x8xf32>
      %123 = tpu.matmul %118, %120, %cst_56 {dimension_numbers = #tpu.dot_dimension_numbers<[1], [1], [0], [0], [0, 0, 1, 0], [], []>} : vector<8x8xbf16>, vector<8x8xbf16>, vector<8x8xf32> -> vector<8x8xf32>
      %c2 = arith.constant 2 : index
      %124 = memref.load %arg2[%c2] : memref<4xf32, #tpu.memory_space<smem>>
      %125 = vector.broadcast %124 : f32 to vector<8x8xf32>
      %126 = arith.mulf %125, %68 : vector<8x8xf32>
      %127 = arith.addf %123, %126 : vector<8x8xf32>
      %cst_57 = arith.constant dense<0xFF800000> : vector<8xf32>
      %128 = vector.multi_reduction <maximumf>, %127, %cst_57 [1] : vector<8x8xf32> to vector<8xf32>
      %129 = vector.shape_cast %128 : vector<8xf32> to vector<8x1xf32>
      %130 = vector.broadcast %129 : vector<8x1xf32> to vector<8x8xf32>
      %131 = arith.subf %127, %130 : vector<8x8xf32>
      %132 = math.exp %131 : vector<8x8xf32>
      %cst_58 = arith.constant dense<0.000000e+00> : vector<8xf32>
      %133 = vector.multi_reduction <add>, %132, %cst_58 [1] : vector<8x8xf32> to vector<8xf32>
      %134 = vector.shape_cast %133 : vector<8xf32> to vector<8x1xf32>
      %135 = tpu.reciprocal %134 {approx = true} : vector<8x1xf32> -> vector<8x1xf32>
      %136 = arith.truncf %132 : vector<8x8xf32> to vector<8x8xbf16>
      %cst_59 = arith.constant dense<0.000000e+00> : vector<8x8xf32>
      %137 = tpu.matmul %136, %122, %cst_59 {dimension_numbers = #tpu.dot_dimension_numbers<[1], [0], [0], [1], [0, 0, 1, 1], [], []>} : vector<8x8xbf16>, vector<8x8xbf16>, vector<8x8xf32> -> vector<8x8xf32>
      %138 = vector.broadcast %135 : vector<8x1xf32> to vector<8x8xf32>
      %139 = arith.mulf %137, %138 : vector<8x8xf32>
      %c0_60 = arith.constant 0 : index
      %c16 = arith.constant 16 : index
      %140 = vector.load %arg21[%c0_60, %c16] : memref<8x32xf32, #tpu.memory_space<vmem>>, vector<8x8xf32>
      tpu.vector_store %arg21[%c0_60, %c16], %139 {strides = array<i32>} : memref<8x32xf32, #tpu.memory_space<vmem>>, vector<8x8xf32>,
      %141 = vector.extract_strided_slice %51 {offsets = [0, 24], sizes = [8, 8], strides = [1, 1]} : vector<8x32xf32> to vector<8x8xf32>
      %142 = arith.truncf %141 : vector<8x8xf32> to vector<8x8xbf16>
      %143 = vector.extract_strided_slice %56 {offsets = [0, 24], sizes = [8, 8], strides = [1, 1]} : vector<8x32xf32> to vector<8x8xf32>
      %144 = arith.truncf %143 : vector<8x8xf32> to vector<8x8xbf16>
      %145 = vector.extract_strided_slice %61 {offsets = [0, 24], sizes = [8, 8], strides = [1, 1]} : vector<8x32xf32> to vector<8x8xf32>
      %146 = arith.truncf %145 : vector<8x8xf32> to vector<8x8xbf16>
      %cst_61 = arith.constant dense<0.000000e+00> : vector<8x8xf32>
      %147 = tpu.matmul %142, %144, %cst_61 {dimension_numbers = #tpu.dot_dimension_numbers<[1], [1], [0], [0], [0, 0, 1, 0], [], []>} : vector<8x8xbf16>, vector<8x8xbf16>, vector<8x8xf32> -> vector<8x8xf32>
      %c3 = arith.constant 3 : index
      %148 = memref.load %arg2[%c3] : memref<4xf32, #tpu.memory_space<smem>>
      %149 = vector.broadcast %148 : f32 to vector<8x8xf32>
      %150 = arith.mulf %149, %68 : vector<8x8xf32>
      %151 = arith.addf %147, %150 : vector<8x8xf32>
      %cst_62 = arith.constant dense<0xFF800000> : vector<8xf32>
      %152 = vector.multi_reduction <maximumf>, %151, %cst_62 [1] : vector<8x8xf32> to vector<8xf32>
      %153 = vector.shape_cast %152 : vector<8xf32> to vector<8x1xf32>
      %154 = vector.broadcast %153 : vector<8x1xf32> to vector<8x8xf32>
      %155 = arith.subf %151, %154 : vector<8x8xf32>
      %156 = math.exp %155 : vector<8x8xf32>
      %cst_63 = arith.constant dense<0.000000e+00> : vector<8xf32>
      %157 = vector.multi_reduction <add>, %156, %cst_63 [1] : vector<8x8xf32> to vector<8xf32>
      %158 = vector.shape_cast %157 : vector<8xf32> to vector<8x1xf32>
      %159 = tpu.reciprocal %158 {approx = true} : vector<8x1xf32> -> vector<8x1xf32>
      %160 = arith.truncf %156 : vector<8x8xf32> to vector<8x8xbf16>
      %cst_64 = arith.constant dense<0.000000e+00> : vector<8x8xf32>
      %161 = tpu.matmul %160, %146, %cst_64 {dimension_numbers = #tpu.dot_dimension_numbers<[1], [0], [0], [1], [0, 0, 1, 1], [], []>} : vector<8x8xbf16>, vector<8x8xbf16>, vector<8x8xf32> -> vector<8x8xf32>
      %162 = vector.broadcast %159 : vector<8x1xf32> to vector<8x8xf32>
      %163 = arith.mulf %161, %162 : vector<8x8xf32>
      %c0_65 = arith.constant 0 : index
      %c24 = arith.constant 24 : index
      %164 = vector.load %arg21[%c0_65, %c24] : memref<8x32xf32, #tpu.memory_space<vmem>>, vector<8x8xf32>
      tpu.vector_store %arg21[%c0_65, %c24], %163 {strides = array<i32>} : memref<8x32xf32, #tpu.memory_space<vmem>>, vector<8x8xf32>,
      %c0_66 = arith.constant 0 : index
      %c0_67 = arith.constant 0 : index
      %165 = vector.load %arg21[%c0_66, %c0_67] : memref<8x32xf32, #tpu.memory_space<vmem>>, vector<8x32xf32>
      %166 = arith.truncf %165 : vector<8x32xf32> to vector<8x32xbf16>
      %c0_68 = arith.constant 0 : index
      %c0_69 = arith.constant 0 : index
      %167 = vector.load %arg12[%c0_68, %c0_69] : memref<32x32xbf16, #tpu.memory_space<vmem>>, vector<32x32xbf16>
      %cst_70 = arith.constant dense<0.000000e+00> : vector<8x32xf32>
      %168 = tpu.matmul %166, %167, %cst_70 {dimension_numbers = #tpu.dot_dimension_numbers<[1], [0], [0], [1], [0, 0, 1, 1], [], []>} : vector<8x32xbf16>, vector<32x32xbf16>, vector<8x32xf32> -> vector<8x32xf32>
      %c0_71 = arith.constant 0 : index
      %c0_72 = arith.constant 0 : index
      %169 = vector.load %arg13[%c0_71, %c0_72] : memref<1x32xf32, #tpu.memory_space<vmem>>, vector<1x32xf32>
      %170 = vector.broadcast %169 : vector<1x32xf32> to vector<8x32xf32>
      %171 = arith.addf %168, %170 : vector<8x32xf32>
      %172 = arith.addf %21, %171 : vector<8x32xf32>
      %c0_73 = arith.constant 0 : index
      %c0_74 = arith.constant 0 : index
      %173 = vector.load %arg22[%c0_73, %c0_74] : memref<8x32xf32, #tpu.memory_space<vmem>>, vector<8x32xf32>
      tpu.vector_store %arg22[%c0_73, %c0_74], %172 {strides = array<i32>} : memref<8x32xf32, #tpu.memory_space<vmem>>, vector<8x32xf32>,
      %c0_75 = arith.constant 0 : index
      %c0_76 = arith.constant 0 : index
      %174 = vector.load %arg14[%c0_75, %c0_76] : memref<1x32xf32, #tpu.memory_space<vmem>>, vector<1x32xf32>
      %c0_77 = arith.constant 0 : index
      %c0_78 = arith.constant 0 : index
      %175 = vector.load %arg15[%c0_77, %c0_78] : memref<1x32xf32, #tpu.memory_space<vmem>>, vector<1x32xf32>
      %cst_79 = arith.constant dense<0.000000e+00> : vector<8xf32>
      %176 = vector.multi_reduction <add>, %172, %cst_79 [1] : vector<8x32xf32> to vector<8xf32>
      %177 = vector.shape_cast %176 : vector<8xf32> to vector<8x1xf32>
      %cst_80 = arith.constant 3.200000e+01 : f32
      %178 = vector.broadcast %cst_80 : f32 to vector<8x1xf32>
      %179 = arith.divf %177, %178 : vector<8x1xf32>
      %180 = vector.broadcast %179 : vector<8x1xf32> to vector<8x32xf32>
      %181 = arith.subf %172, %180 : vector<8x32xf32>
      %182 = arith.mulf %181, %181 : vector<8x32xf32>
      %cst_81 = arith.constant dense<0.000000e+00> : vector<8xf32>
      %183 = vector.multi_reduction <add>, %182, %cst_81 [1] : vector<8x32xf32> to vector<8xf32>
      %184 = vector.shape_cast %183 : vector<8xf32> to vector<8x1xf32>
      %cst_82 = arith.constant 3.200000e+01 : f32
      %185 = vector.broadcast %cst_82 : f32 to vector<8x1xf32>
      %186 = arith.divf %184, %185 : vector<8x1xf32>
      %187 = vector.broadcast %179 : vector<8x1xf32> to vector<8x32xf32>
      %188 = arith.subf %172, %187 : vector<8x32xf32>
      %cst_83 = arith.constant 9.99999974E-6 : f32
      %189 = vector.broadcast %cst_83 : f32 to vector<8x1xf32>
      %190 = arith.addf %186, %189 : vector<8x1xf32>
      %191 = math.rsqrt %190 : vector<8x1xf32>
      %192 = vector.broadcast %191 : vector<8x1xf32> to vector<8x32xf32>
      %193 = arith.mulf %188, %192 : vector<8x32xf32>
      %194 = vector.broadcast %174 : vector<1x32xf32> to vector<8x32xf32>
      %195 = arith.mulf %193, %194 : vector<8x32xf32>
      %196 = vector.broadcast %175 : vector<1x32xf32> to vector<8x32xf32>
      %197 = arith.addf %195, %196 : vector<8x32xf32>
      %198 = arith.truncf %197 : vector<8x32xf32> to vector<8x32xbf16>
      %c0_84 = arith.constant 0 : index
      %c0_85 = arith.constant 0 : index
      %199 = vector.load %arg23[%c0_84, %c0_85] : memref<8x32xbf16, #tpu.memory_space<vmem>>, vector<8x32xbf16>
      tpu.vector_store %arg23[%c0_84, %c0_85], %198 {strides = array<i32>} : memref<8x32xbf16, #tpu.memory_space<vmem>>, vector<8x32xbf16>,
      %cst_86 = arith.constant 0.000000e+00 : f32
      %200 = vector.broadcast %cst_86 : f32 to vector<8x32xf32>
      %c0_87 = arith.constant 0 : index
      %c0_88 = arith.constant 0 : index
      %201 = vector.load %arg24[%c0_87, %c0_88] : memref<8x32xf32, #tpu.memory_space<vmem>>, vector<8x32xf32>
      tpu.vector_store %arg24[%c0_87, %c0_88], %200 {strides = array<i32>} : memref<8x32xf32, #tpu.memory_space<vmem>>, vector<8x32xf32>,
    } else {
    }
    %c0 = arith.constant 0 : index
    %c0_1 = arith.constant 0 : index
    %3 = vector.load %arg23[%c0, %c0_1] : memref<8x32xbf16, #tpu.memory_space<vmem>>, vector<8x32xbf16>
    %c0_2 = arith.constant 0 : index
    %c0_3 = arith.constant 0 : index
    %4 = vector.load %arg16[%c0_2, %c0_3] : memref<32x128xbf16, #tpu.memory_space<vmem>>, vector<32x128xbf16>
    %cst = arith.constant dense<0.000000e+00> : vector<8x128xf32>
    %5 = tpu.matmul %3, %4, %cst {dimension_numbers = #tpu.dot_dimension_numbers<[1], [0], [0], [1], [0, 0, 1, 1], [], []>} : vector<8x32xbf16>, vector<32x128xbf16>, vector<8x128xf32> -> vector<8x128xf32>
    %c0_4 = arith.constant 0 : index
    %c0_5 = arith.constant 0 : index
    %6 = vector.load %arg17[%c0_4, %c0_5] : memref<1x128xf32, #tpu.memory_space<vmem>>, vector<1x128xf32>
    %7 = vector.broadcast %6 : vector<1x128xf32> to vector<8x128xf32>
    %8 = arith.addf %5, %7 : vector<8x128xf32>
    %cst_6 = arith.constant 0.000000e+00 : f32
    %9 = vector.broadcast %cst_6 : f32 to vector<8x128xf32>
    %10 = arith.maximumf %8, %9 : vector<8x128xf32>
    %c0_7 = arith.constant 0 : index
    %c0_8 = arith.constant 0 : index
    %11 = vector.load %arg24[%c0_7, %c0_8] : memref<8x32xf32, #tpu.memory_space<vmem>>, vector<8x32xf32>
    %12 = arith.truncf %10 : vector<8x128xf32> to vector<8x128xbf16>
    %c0_9 = arith.constant 0 : index
    %c0_10 = arith.constant 0 : index
    %13 = vector.load %arg18[%c0_9, %c0_10] : memref<128x32xbf16, #tpu.memory_space<vmem>>, vector<128x32xbf16>
    %cst_11 = arith.constant dense<0.000000e+00> : vector<8x32xf32>
    %14 = tpu.matmul %12, %13, %cst_11 {dimension_numbers = #tpu.dot_dimension_numbers<[1], [0], [0], [1], [0, 0, 1, 1], [], []>} : vector<8x128xbf16>, vector<128x32xbf16>, vector<8x32xf32> -> vector<8x32xf32>
    %15 = arith.addf %11, %14 : vector<8x32xf32>
    %c0_12 = arith.constant 0 : index
    %c0_13 = arith.constant 0 : index
    %16 = vector.load %arg24[%c0_12, %c0_13] : memref<8x32xf32, #tpu.memory_space<vmem>>, vector<8x32xf32>
    tpu.vector_store %arg24[%c0_12, %c0_13], %15 {strides = array<i32>} : memref<8x32xf32, #tpu.memory_space<vmem>>, vector<8x32xf32>,
    %c0_i32_14 = arith.constant 0 : i32
    %17 = arith.cmpi eq, %arg1, %c0_i32_14 : i32
    %18 = arith.extui %17 : i1 to i32
    %c0_i32_15 = arith.constant 0 : i32
    %19 = arith.cmpi ne, %18, %c0_i32_15 : i32
    scf.if %19 {
      %c0_16 = arith.constant 0 : index
      %c0_17 = arith.constant 0 : index
      %20 = vector.load %arg22[%c0_16, %c0_17] : memref<8x32xf32, #tpu.memory_space<vmem>>, vector<8x32xf32>
      %c0_18 = arith.constant 0 : index
      %c0_19 = arith.constant 0 : index
      %21 = vector.load %arg24[%c0_18, %c0_19] : memref<8x32xf32, #tpu.memory_space<vmem>>, vector<8x32xf32>
      %22 = arith.addf %20, %21 : vector<8x32xf32>
      %c0_20 = arith.constant 0 : index
      %c0_21 = arith.constant 0 : index
      %23 = vector.load %arg19[%c0_20, %c0_21] : memref<1x32xf32, #tpu.memory_space<vmem>>, vector<1x32xf32>
      %24 = vector.broadcast %23 : vector<1x32xf32> to vector<8x32xf32>
      %25 = arith.addf %22, %24 : vector<8x32xf32>
      %c0_22 = arith.constant 0 : index
      %c0_23 = arith.constant 0 : index
      %c0_24 = arith.constant 0 : index
      %26 = vector.load %arg20[%c0_22, %c0_23, %c0_24] : memref<1x8x32xf32, #tpu.memory_space<vmem>>, vector<1x8x32xf32>
      %27 = vector.shape_cast %26 : vector<1x8x32xf32> to vector<8x32xf32>
      %28 = vector.shape_cast %25 : vector<8x32xf32> to vector<1x8x32xf32>
      tpu.vector_store %arg20[%c0_22, %c0_23, %c0_24], %28 {strides = array<i32>} : memref<1x8x32xf32, #tpu.memory_space<vmem>>, vector<1x8x32xf32>,
    } else {
    }
    return
  }
  func.func @transform_0(%arg0: i32, %arg1: i32) -> i32 {
    %c0_i32 = arith.constant 0 : i32
    %c0_i32_0 = arith.constant 0 : i32
    return %c0_i32 : i32
  }
  func.func @transform_1(%arg0: i32, %arg1: i32) -> (i32, i32, i32) {
    %c0_i32 = arith.constant 0 : i32
    %c0_i32_0 = arith.constant 0 : i32
    %c0_i32_1 = arith.constant 0 : i32
    return %arg0, %c0_i32, %c0_i32_0 : i32, i32, i32
  }
  func.func @transform_2(%arg0: i32, %arg1: i32) -> (i32, i32) {
    %c0_i32 = arith.constant 0 : i32
    %c0_i32_0 = arith.constant 0 : i32
    %c0_i32_1 = arith.constant 0 : i32
    return %c0_i32, %c0_i32_0 : i32, i32
  }
  func.func @transform_3(%arg0: i32, %arg1: i32) -> (i32, i32) {
    %c0_i32 = arith.constant 0 : i32
    %c0_i32_0 = arith.constant 0 : i32
    %c0_i32_1 = arith.constant 0 : i32
    return %c0_i32, %c0_i32_0 : i32, i32
  }
  func.func @transform_4(%arg0: i32, %arg1: i32) -> (i32, i32) {
    %c0_i32 = arith.constant 0 : i32
    %c0_i32_0 = arith.constant 0 : i32
    %c0_i32_1 = arith.constant 0 : i32
    return %c0_i32, %c0_i32_0 : i32, i32
  }
  func.func @transform_5(%arg0: i32, %arg1: i32) -> (i32, i32) {
    %c0_i32 = arith.constant 0 : i32
    %c0_i32_0 = arith.constant 0 : i32
    %c0_i32_1 = arith.constant 0 : i32
    return %c0_i32, %c0_i32_0 : i32, i32
  }
  func.func @transform_6(%arg0: i32, %arg1: i32) -> (i32, i32) {
    %c0_i32 = arith.constant 0 : i32
    %c0_i32_0 = arith.constant 0 : i32
    %c0_i32_1 = arith.constant 0 : i32
    return %c0_i32, %c0_i32_0 : i32, i32
  }
  func.func @transform_7(%arg0: i32, %arg1: i32) -> (i32, i32) {
    %c0_i32 = arith.constant 0 : i32
    %c0_i32_0 = arith.constant 0 : i32
    %c0_i32_1 = arith.constant 0 : i32
    return %c0_i32, %c0_i32_0 : i32, i32
  }
  func.func @transform_8(%arg0: i32, %arg1: i32) -> (i32, i32) {
    %c0_i32 = arith.constant 0 : i32
    %c0_i32_0 = arith.constant 0 : i32
    %c0_i32_1 = arith.constant 0 : i32
    return %c0_i32, %c0_i32_0 : i32, i32
  }
  func.func @transform_9(%arg0: i32, %arg1: i32) -> (i32, i32) {
    %c0_i32 = arith.constant 0 : i32
    %c0_i32_0 = arith.constant 0 : i32
    %c0_i32_1 = arith.constant 0 : i32
    return %c0_i32, %c0_i32_0 : i32, i32
  }
  func.func @transform_10(%arg0: i32, %arg1: i32) -> (i32, i32) {
    %c0_i32 = arith.constant 0 : i32
    %c0_i32_0 = arith.constant 0 : i32
    %c0_i32_1 = arith.constant 0 : i32
    return %c0_i32, %c0_i32_0 : i32, i32
  }
  func.func @transform_11(%arg0: i32, %arg1: i32) -> (i32, i32) {
    %c0_i32 = arith.constant 0 : i32
    %c0_i32_0 = arith.constant 0 : i32
    %c0_i32_1 = arith.constant 0 : i32
    return %c0_i32, %c0_i32_0 : i32, i32
  }
  func.func @transform_12(%arg0: i32, %arg1: i32) -> (i32, i32) {
    %c0_i32 = arith.constant 0 : i32
    %c0_i32_0 = arith.constant 0 : i32
    %c0_i32_1 = arith.constant 0 : i32
    return %c0_i32, %c0_i32_0 : i32, i32
  }
  func.func @transform_13(%arg0: i32, %arg1: i32) -> (i32, i32) {
    %c0_i32 = arith.constant 0 : i32
    %c0_i32_0 = arith.constant 0 : i32
    %c0_i32_1 = arith.constant 0 : i32
    return %c0_i32, %c0_i32_0 : i32, i32
  }
  func.func @transform_14(%arg0: i32, %arg1: i32) -> (i32, i32) {
    %c0_i32 = arith.constant 0 : i32
    %c0_i32_0 = arith.constant 0 : i32
    return %c0_i32, %arg1 : i32, i32
  }
  func.func @transform_15(%arg0: i32, %arg1: i32) -> (i32, i32) {
    %c0_i32 = arith.constant 0 : i32
    %c0_i32_0 = arith.constant 0 : i32
    return %c0_i32, %arg1 : i32, i32
  }
  func.func @transform_16(%arg0: i32, %arg1: i32) -> (i32, i32) {
    %c0_i32 = arith.constant 0 : i32
    %c0_i32_0 = arith.constant 0 : i32
    return %arg1, %c0_i32 : i32, i32
  }
  func.func @transform_17(%arg0: i32, %arg1: i32) -> (i32, i32) {
    %c0_i32 = arith.constant 0 : i32
    %c0_i32_0 = arith.constant 0 : i32
    %c0_i32_1 = arith.constant 0 : i32
    return %c0_i32, %c0_i32_0 : i32, i32
  }
  func.func @transform_18(%arg0: i32, %arg1: i32) -> (i32, i32, i32) {
    %c0_i32 = arith.constant 0 : i32
    %c0_i32_0 = arith.constant 0 : i32
    %c0_i32_1 = arith.constant 0 : i32
    return %arg0, %c0_i32, %c0_i32_0 : i32, i32, i32
  }
}

</mosaic_0001>

<bundles_post_ra>
// kernel: tpu_custom_call.1
= control target key start
LH: loop header
LB: loop body
LE: loop exit
PB: predicated region body
PF: predicated region fallthrough
CT: control target
= control target key end

     0   :  { %s4068_s0 = inlined_call_operand.hbm [shape: f32[4], index: 0, kind: input, shape index: {}]   ;;  %s4069_s1 = inlined_call_operand.hbm [shape: f32[2,8,32], index: 1, kind: input, shape index: {}]   ;;  %s4070_s2 = inlined_call_operand.hbm [shape: f32[1,32], index: 2, kind: input, shape index: {}]   ;;  %s4071_s3 = inlined_call_operand.hbm [shape: f32[1,32], index: 3, kind: input, shape index: {}]   ;;  %s4072_s4 = inlined_call_operand.hbm [shape: bf16[32,32], index: 4, kind: input, shape index: {}]   ;;  %s4073_s5 = inlined_call_operand.hbm [shape: f32[1,32], index: 5, kind: input, shape index: {}]   ;;  %s4074_s6 = inlined_call_operand.hbm [shape: bf16[32,32], index: 6, kind: input, shape index: {}]   ;;  %s4075_s7 = inlined_call_operand.hbm [shape: f32[1,32], index: 7, kind: input, shape index: {}]   ;;  %s4076_s8 = inlined_call_operand.hbm [shape: bf16[32,32], index: 8, kind: input, shape index: {}]   ;;  %s4077_s9 = inlined_call_operand.hbm [shape: f32[1,32], index: 9, kind: input, shape index: {}]   ;;  %s4078_s10 = inlined_call_operand.hbm [shape: bf16[32,32], index: 10, kind: input, shape index: {}]   ;;  %s4079_s11 = inlined_call_operand.hbm [shape: f32[1,32], index: 11, kind: input, shape index: {}]   ;;  %s4080_s12 = inlined_call_operand.hbm [shape: f32[1,32], index: 12, kind: input, shape index: {}]   ;;  %s4081_s13 = inlined_call_operand.hbm [shape: f32[1,32], index: 13, kind: input, shape index: {}]   ;;  %s4082_s14 = inlined_call_operand.hbm [shape: bf16[32,128], index: 14, kind: input, shape index: {}]   ;;  %s4083_s15 = inlined_call_operand.hbm [shape: f32[1,128], index: 15, kind: input, shape index: {}]   ;;  %s4084_s16 = inlined_call_operand.hbm [shape: bf16[128,32], index: 16, kind: input, shape index: {}]   ;;  %s4085_s17 = inlined_call_operand.hbm [shape: f32[1,32], index: 17, kind: input, shape index: {}]   ;;  %s4086_s18 = inlined_call_operand.hbm [shape: f32[2,8,32], index: 18, kind: output, shape index: {}]  }
   0x1   :  { %4105 = sst [smem:[#allocation54_spill]] %s4068_s0 }
   0x2   :  { %4106 = sst [smem:[#allocation55_spill]] %s4069_s1 }
   0x3   :  { %4107 = sst [smem:[#allocation56_spill]] %s4070_s2 }
   0x4   :  { %4108 = sst [smem:[#allocation57_spill]] %s4071_s3 }
   0x5   :  { %4109 = sst [smem:[#allocation58_spill]] %s4072_s4 }
   0x6   :  { %4110 = sst [smem:[#allocation59_spill]] %s4073_s5 }
   0x7   :  { %4111 = sst [smem:[#allocation60_spill]] %s4085_s17 }
   0x8   :  { %4112 = sst [smem:[#allocation61_spill]] %s4086_s18 }
   0x9   :  { %23 = vsyncpa [#allocation9], 0 }
   0xa   :  { %24 = vsyncpa [#allocation7], 0 }
   0xb   :  { %26 = vsyncpa [#allocation7 + $0x1], 0 }
   0xc   :  { %27 = vsyncpa [#allocation12], 0 }
   0xd   :  { %28 = vsyncpa [#allocation15], 0 }
   0xe   :  { %29 = vsyncpa [#allocation18], 0 }
   0xf   :  { %30 = vsyncpa [#allocation21], 0 }
  0x10   :  { %31 = vsyncpa [#allocation24], 0 }
  0x11   :  { %32 = vsyncpa [#allocation27], 0 }
  0x12   :  { %33 = vsyncpa [#allocation30], 0 }
  0x13   :  { %34 = vsyncpa [#allocation33], 0 }
  0x14   :  { %35 = vsyncpa [#allocation8], 0 }
  0x15   :  { %37 = vsyncpa [#allocation8 + $0x1], 0  ;;  %s3373_s27 = smov 0   ;;  %s3375_s28 = smov 0  }
  0x16   :  { %s3377_s29 = smov 0   ;;  %s3379_s30 = smov 0  }
  0x17   :  { %s3381_s0 = smov 0   ;;  %s3383_s19 = smov 0  }
  0x18 LB: > { %4113 = sst [smem:[#allocation47_spill]] %s3227_s27  ;;  %s3249_s1 = smov [#allocation11]   ;;  %s3247_s19 = sphi %s3383_s19, %s43_s19   ;;  %s3243_s0 = sphi %s3381_s0, %s4159_s0   ;;  %s3239_s30 = sphi %s3379_s30, %s4157_s30   ;;  %s3235_s29 = sphi %s3377_s29, %s4158_s29   ;;  %s3231_s28 = sphi %s3375_s28, %s4156_s28   ;;  %s3227_s27 = sphi %s3373_s27, %s4155_s27  }
  0x19   : > { %4114 = sst [smem:[#allocation48_spill]] %s3231_s28  ;;  %s506_s20 = sshll.u32 %s3249_s1, 4  ;;  %s3412_s20 = int_to_ptr.vmem [resolvable:$true] %s506_s20 }
  0x1a   : > { %4115 = sst [smem:[#allocation49_spill]] %s3235_s29  ;;  %s4090_s21 = sadd.s32 4294967295, %s3247_s19  }
  0x1b   : > { %4116 = sst [smem:[#allocation50_spill]] %s3239_s30  ;;  %p2120_p0 = scmp.ge.s32.totalorder %s3247_s19, 1 }
  0x1c   : > { %4117 = sst [smem:[#allocation51_spill]] %s3243_s0  ;;  %p3407_p1 = scmp.eq.s32.totalorder %s4090_s21, 0 }
  0x1d   : > { %p484_p2 = scmp.lt.s32.totalorder %s3247_s19, 3  ;;  %s3250_s23 = smov [#allocation14]  }
  0x1e   : > { %s4118_s22 = scalar_select %p3407_p1, 1, 0 }
  0x1f   : > { %p3414_p3 = pnand %p2120_p0, %p484_p2  ;;  %s527_s24 = sshll.u32 %s3250_s23, 4  ;;  %s3421_s24 = int_to_ptr.vmem [resolvable:$true] %s527_s24 }
  0x20   : > { %4119 = sst [smem:[#allocation52_spill]] %s4118_s22  ;;  %s3251_s26 = smov [#allocation17]  }
  0x21   : > { %s4120_s2 = scalar_select %p3414_p3, 1, 0 }
  0x22   : > { %p2429_p5 = pneg %p3414_p3  ;;  %s551_s1 = sshll.u32 %s3251_s26, 4  ;;  %s3429_s1 = int_to_ptr.vmem [resolvable:$true] %s551_s1 }
  0x23   : > { %4121 = sst [smem:[#allocation53_spill]] %s4120_s2  ;;  %s4123_s30 = sld [smem:[#allocation56_spill]] }
  0x24   : > { %p3425_p6 = pnand %p2429_p5, %p3407_p1 }
  0x26   : > { %p3439_p8 = pneg %p3425_p6 }
  0x29   : > { %s4124_s17 = smov %s4123_s30  ;;  %s2638_s27 = scalar_lea.hbm %s4123_s30, 16 }
  0x2a   : > { %p2639_p7 = scmp.ne.s32.totalorder %s4124_s17, %s2638_s27  ;;  %p2645_p11 = scmp.lt.u32.totalorder %s2638_s27, %s4124_s17 }
  0x2c   : > { %p2641_p9 = pnand %p3439_p8, %p2639_p7 }
  0x2e   : > { %p2642_p10 = pneg %p2641_p9 }
  0x30   : > { %p2647_p12 = pnand %p2645_p11, %p2642_p10 }
  0x32   : > { %2650 = shalt.err (!%p2647_p12)
}
  0x33   : > { %s2651_s18 = scalar_lea.vmem %s3412_s20, 16  ;;  %s2658_s28 = scalar_lea.vmem %s3412_s20, 32 }
  0x34   : > { %p2652_p13 = scmp.ne.s32.totalorder %s3412_s20, %s2651_s18  ;;  %p2659_p5 = scmp.lt.s32.totalorder %s3412_s20, %s3412_s20 }
  0x35   : > { %p2660_p7 = scmp.lt.s32.totalorder %s2658_s28, %s2651_s18 }
  0x36   : > { %p2654_p0 = pnand %p2652_p13, %p3439_p8 }
  0x37   : > { %p2661_p9 = por %p2660_p7, %p2659_p5 }
  0x38   : > { %p2655_p2 = pneg %p2654_p0 }
  0x3a   : > { %p2662_p4 = pnand %p2661_p9, %p2655_p2 }
  0x3c   : > { %2665 = shalt.err (!%p2662_p4)
}
  0x3d   : > { %2435 = dma.hbm_to_vmem [thread:$0]  (!%p3425_p6), %s4124_s17, 16, %s3412_s20, [#allocation12]  }
  0x3e   : > { %s4126_s4 = sld [smem:[#allocation58_spill]] }
  0x44   : > { %s2666_s2 = scalar_lea.hbm %s4126_s4, 256 }
  0x45   : > { %p2667_p10 = scmp.ne.s32.totalorder %s4126_s4, %s2666_s2  ;;  %p2673_p4 = scmp.lt.u32.totalorder %s2666_s2, %s4126_s4 }
  0x47   : > { %p2669_p11 = pnand %p2667_p10, %p3439_p8 }
  0x49   : > { %p2670_p12 = pneg %p2669_p11 }
  0x4b   : > { %p2675_p13 = pnand %p2673_p4, %p2670_p12 }
  0x4d   : > { %2678 = shalt.err (!%p2675_p13)
}
  0x4e   : > { %s2679_s20 = scalar_lea.vmem %s3421_s24, 256  ;;  %p2687_p7 = scmp.lt.s32.totalorder %s3421_s24, %s3421_s24 }
  0x4f   : > { %p2680_p0 = scmp.ne.s32.totalorder %s3421_s24, %s2679_s20  ;;  %p2688_p9 = scmp.lt.s32.totalorder %s2679_s20, %s2679_s20 }
  0x51   : > { %p2682_p2 = pnand %p2680_p0, %p3439_p8  ;;  %p2689_p10 = por %p2688_p9, %p2687_p7 }
  0x53   : > { %p2683_p5 = pneg %p2682_p2 }
  0x55   : > { %p2690_p11 = pnand %p2689_p10, %p2683_p5 }
  0x57   : > { %2693 = shalt.err (!%p2690_p11)
}
  0x58   : > { %s3252_s29 = smov 64   ;;  %s3253_s27 = smov 4  }
  0x59   : > { %2441 = dma.hbm_to_vmem [thread:$0]  (!%p3425_p6), %s4126_s4, 256, %s3421_s24, [#allocation15], %s3252_s29, %s3252_s29, %s3253_s27  }
  0x5a   : > { %s2694_s26 = scalar_lea.hbm %s4074_s6, 256 }
  0x5b   : > { %p2695_p12 = scmp.ne.s32.totalorder %s4074_s6, %s2694_s26  ;;  %p2701_p0 = scmp.lt.u32.totalorder %s2694_s26, %s4074_s6 }
  0x5d   : > { %p2697_p4 = pnand %p2695_p12, %p3439_p8 }
  0x5f   : > { %p2698_p13 = pneg %p2697_p4 }
  0x61   : > { %p2703_p2 = pnand %p2701_p0, %p2698_p13 }
  0x63   : > { %2706 = shalt.err (!%p2703_p2)
}
  0x64   : > { %s2707_s24 = scalar_lea.vmem %s3429_s1, 256  ;;  %p2715_p10 = scmp.lt.s32.totalorder %s3429_s1, %s3429_s1 }
  0x65   : > { %p2708_p5 = scmp.ne.s32.totalorder %s3429_s1, %s2707_s24  ;;  %p2716_p11 = scmp.lt.s32.totalorder %s2707_s24, %s2707_s24 }
  0x67   : > { %p2710_p7 = pnand %p2708_p5, %p3439_p8  ;;  %p2717_p12 = por %p2716_p11, %p2715_p10 }
  0x69   : > { %p2711_p9 = pneg %p2710_p7 }
  0x6b   : > { %p2718_p4 = pnand %p2717_p12, %p2711_p9 }
  0x6d   : > { %2721 = shalt.err (!%p2718_p4)
}
  0x6e   : > { %2447 = dma.hbm_to_vmem [thread:$0]  (!%p3425_p6), %s4074_s6, 256, %s3429_s1, [#allocation18], %s3252_s29, %s3252_s29, %s3253_s27  }
  0x6f   : > { %s3254_s21 = smov [#allocation20]   ;;  %s3255_s2 = smov [#allocation23]  }
  0x70   : > { %s575_s22 = sshll.u32 %s3254_s21, 4  ;;  %s599_s26 = sshll.u32 %s3255_s2, 4  ;;  %s576_s22 = int_to_ptr.vmem [resolvable:$true] %s575_s22  ;;  %s600_s26 = int_to_ptr.vmem [resolvable:$true] %s599_s26 }
  0x71   : > { %s2722_s20 = scalar_lea.hbm %s4076_s8, 256 }
  0x72   : > { %p2723_p13 = scmp.ne.s32.totalorder %s4076_s8, %s2722_s20  ;;  %p2729_p5 = scmp.lt.u32.totalorder %s2722_s20, %s4076_s8 }
  0x74   : > { %p2725_p0 = pnand %p2723_p13, %p3439_p8 }
  0x76   : > { %p2726_p2 = pneg %p2725_p0 }
  0x78   : > { %p2731_p7 = pnand %p2729_p5, %p2726_p2 }
  0x7a   : > { %2734 = shalt.err (!%p2731_p7)
}
  0x7b   : > { %s2735_s1 = scalar_lea.vmem %s576_s22, 256  ;;  %p2743_p12 = scmp.lt.s32.totalorder %s576_s22, %s576_s22 }
  0x7c   : > { %p2736_p9 = scmp.ne.s32.totalorder %s576_s22, %s2735_s1  ;;  %p2744_p4 = scmp.lt.s32.totalorder %s2735_s1, %s2735_s1 }
  0x7e   : > { %p2738_p10 = pnand %p2736_p9, %p3439_p8  ;;  %p2745_p3 = por %p2744_p4, %p2743_p12 }
  0x80   : > { %p2739_p11 = pneg %p2738_p10 }
  0x82   : > { %p2746_p1 = pnand %p2745_p3, %p2739_p11 }
  0x84   : > { %2749 = shalt.err (!%p2746_p1)
}
  0x85   : > { %2453 = dma.hbm_to_vmem [thread:$0]  (!%p3425_p6), %s4076_s8, 256, %s576_s22, [#allocation21], %s3252_s29, %s3252_s29, %s3253_s27  }
  0x86   : > { %s2750_s2 = scalar_lea.hbm %s4078_s10, 256 }
  0x87   : > { %p2751_p3 = scmp.ne.s32.totalorder %s4078_s10, %s2750_s2  ;;  %p2757_p0 = scmp.lt.u32.totalorder %s2750_s2, %s4078_s10 }
  0x89   : > { %p2753_p1 = pnand %p2751_p3, %p3439_p8 }
  0x8b   : > { %p2754_p13 = pneg %p2753_p1 }
  0x8d   : > { %p2759_p2 = pnand %p2757_p0, %p2754_p13 }
  0x8f   : > { %2762 = shalt.err (!%p2759_p2)
}
  0x90   : > { %s2763_s17 = scalar_lea.vmem %s600_s26, 256  ;;  %p2771_p10 = scmp.lt.s32.totalorder %s600_s26, %s600_s26 }
  0x91   : > { %p2764_p5 = scmp.ne.s32.totalorder %s600_s26, %s2763_s17  ;;  %p2772_p11 = scmp.lt.s32.totalorder %s2763_s17, %s2763_s17 }
  0x93   : > { %p2766_p7 = pnand %p2764_p5, %p3439_p8  ;;  %p2773_p12 = por %p2772_p11, %p2771_p10 }
  0x95   : > { %p2767_p9 = pneg %p2766_p7 }
  0x97   : > { %p2774_p4 = pnand %p2773_p12, %p2767_p9 }
  0x99   : > { %2777 = shalt.err (!%p2774_p4)
}
  0x9a   : > { %2459 = dma.hbm_to_vmem [thread:$0]  (!%p3425_p6), %s4078_s10, 256, %s600_s26, [#allocation24], %s3252_s29, %s3252_s29, %s3253_s27  }
  0x9b   : > { %s3256_s4 = smov [#allocation26]   ;;  %s3257_s30 = smov [#allocation29]  }
  0x9c   : > { %s624_s0 = sshll.u32 %s3256_s4, 4  ;;  %s647_s21 = sshll.u32 %s3257_s30, 4  ;;  %s625_s0 = int_to_ptr.vmem [resolvable:$true] %s624_s0  ;;  %s648_s21 = int_to_ptr.vmem [resolvable:$true] %s647_s21 }
  0x9d   : > { %s2778_s28 = scalar_lea.hbm %s4080_s12, 16 }
  0x9e   : > { %p2779_p3 = scmp.ne.s32.totalorder %s4080_s12, %s2778_s28  ;;  %p2785_p0 = scmp.lt.u32.totalorder %s2778_s28, %s4080_s12 }
  0xa0   : > { %p2781_p1 = pnand %p2779_p3, %p3439_p8 }
  0xa2   : > { %p2782_p13 = pneg %p2781_p1 }
  0xa4   : > { %p2787_p2 = pnand %p2785_p0, %p2782_p13 }
  0xa6   : > { %2790 = shalt.err (!%p2787_p2)
}
  0xa7   : > { %s2791_s26 = scalar_lea.vmem %s625_s0, 16  ;;  %s2798_s1 = scalar_lea.vmem %s625_s0, 32 }
  0xa8   : > { %p2792_p5 = scmp.ne.s32.totalorder %s625_s0, %s2791_s26  ;;  %p2799_p10 = scmp.lt.s32.totalorder %s625_s0, %s625_s0 }
  0xa9   : > { %p2800_p11 = scmp.lt.s32.totalorder %s2798_s1, %s2791_s26 }
  0xaa   : > { %p2794_p7 = pnand %p2792_p5, %p3439_p8 }
  0xab   : > { %p2801_p12 = por %p2800_p11, %p2799_p10 }
  0xac   : > { %p2795_p9 = pneg %p2794_p7 }
  0xae   : > { %p2802_p4 = pnand %p2801_p12, %p2795_p9 }
  0xb0   : > { %2805 = shalt.err (!%p2802_p4)
}
  0xb1   : > { %2465 = dma.hbm_to_vmem [thread:$0]  (!%p3425_p6), %s4080_s12, 16, %s625_s0, [#allocation27]  }
  0xb2   : > { %s2806_s28 = scalar_lea.hbm %s4082_s14, 256 }
  0xb3   : > { %p2807_p3 = scmp.ne.s32.totalorder %s4082_s14, %s2806_s28  ;;  %p2813_p0 = scmp.lt.u32.totalorder %s2806_s28, %s4082_s14 }
  0xb5   : > { %p2809_p1 = pnand %p2807_p3, %p3439_p8 }
  0xb7   : > { %p2810_p13 = pneg %p2809_p1 }
  0xb9   : > { %p2815_p2 = pnand %p2813_p0, %p2810_p13 }
  0xbb   : > { %2818 = shalt.err (!%p2815_p2)
}
  0xbc   : > { %s2819_s26 = scalar_lea.vmem %s648_s21, 256  ;;  %p2827_p10 = scmp.lt.s32.totalorder %s648_s21, %s648_s21 }
  0xbd   : > { %p2820_p5 = scmp.ne.s32.totalorder %s648_s21, %s2819_s26  ;;  %p2828_p11 = scmp.lt.s32.totalorder %s2819_s26, %s2819_s26 }
  0xbf   : > { %p2822_p7 = pnand %p2820_p5, %p3439_p8  ;;  %p2829_p12 = por %p2828_p11, %p2827_p10 }
  0xc1   : > { %p2823_p9 = pneg %p2822_p7 }
  0xc3   : > { %p2830_p4 = pnand %p2829_p12, %p2823_p9 }
  0xc5   : > { %2833 = shalt.err (!%p2830_p4)
}
  0xc6   : > { %2471 = dma.hbm_to_vmem [thread:$0]  (!%p3425_p6), %s4082_s14, 256, %s648_s21, [#allocation30], %s3252_s29, %s3252_s29, %s3253_s27  }
  0xc7   : > { %s3258_s4 = smov [#allocation32]   ;;  %s2834_s28 = scalar_lea.hbm %s4084_s16, 1024 }
  0xc8   : > { %s676_s30 = sshll.u32 %s3258_s4, 4  ;;  %p2835_p3 = scmp.ne.s32.totalorder %s4084_s16, %s2834_s28  ;;  %s677_s30 = int_to_ptr.vmem [resolvable:$true] %s676_s30 }
  0xc9   : > { %p2841_p0 = scmp.lt.u32.totalorder %s2834_s28, %s4084_s16 }
  0xca   : > { %p2837_p1 = pnand %p2835_p3, %p3439_p8 }
  0xcc   : > { %p2838_p13 = pneg %p2837_p1 }
  0xce   : > { %p2843_p2 = pnand %p2841_p0, %p2838_p13 }
  0xd0   : > { %2846 = shalt.err (!%p2843_p2)
}
  0xd1   : > { %s2847_s21 = scalar_lea.vmem %s677_s30, 1024  ;;  %p2855_p10 = scmp.lt.s32.totalorder %s677_s30, %s677_s30 }
  0xd2   : > { %p2848_p5 = scmp.ne.s32.totalorder %s677_s30, %s2847_s21  ;;  %p2856_p11 = scmp.lt.s32.totalorder %s2847_s21, %s2847_s21 }
  0xd4   : > { %p2850_p7 = pnand %p2848_p5, %p3439_p8  ;;  %p2857_p12 = por %p2856_p11, %p2855_p10 }
  0xd6   : > { %p2851_p9 = pneg %p2850_p7 }
  0xd8   : > { %p2858_p4 = pnand %p2857_p12, %p2851_p9 }
  0xda   : > { %2861 = shalt.err (!%p2858_p4)
}
  0xdb   : > { %2477 = dma.hbm_to_vmem [thread:$0]  (!%p3425_p6), %s4084_s16, 1024, %s677_s30, [#allocation33], %s3252_s29, %s3252_s29, %s3253_s27  }
  0xdc   : > { %s4127_s2 = sld [smem:[#allocation54_spill]] }
  0xe2   : > { %s2862_s18 = scalar_lea.hbm %s4127_s2, 16 }
  0xe3   : > { %p2863_p3 = scmp.ne.s32.totalorder %s4127_s2, %s2862_s18  ;;  %p2869_p0 = scmp.lt.u32.totalorder %s2862_s18, %s4127_s2 }
  0xe5   : > { %p2865_p1 = pnand %p2863_p3, %p3439_p8 }
  0xe7   : > { %p2866_p13 = pneg %p2865_p1 }
  0xe9   : > { %p2871_p2 = pnand %p2869_p0, %p2866_p13 }
  0xeb   : > { %2874 = shalt.err (!%p2871_p2)
}
  0xec   : > { %s3259_s22 = smov [#allocation6]   ;;  %s3260_s30 = smov [#allocation13]  }
  0xed   : > { %2432 = dma.hbm_to_smem (!%p3425_p6), %s4127_s2, 16, %s3259_s22, [#allocation9]  }
  0xee   : > { %s517_s21 = sshll.u32 %s3260_s30, 4  ;;  %s3261_s26 = smov [#allocation16]   ;;  %s518_s21 = int_to_ptr.vmem [resolvable:$true] %s517_s21 }
  0xef   : > { %s541_s0 = sshll.u32 %s3261_s26, 4  ;;  %s4128_s3 = sld [smem:[#allocation57_spill]]  ;;  %s542_s0 = int_to_ptr.vmem [resolvable:$true] %s541_s0 }
  0xf5   : > { %s2875_s28 = scalar_lea.hbm %s4128_s3, 16 }
  0xf6   : > { %p2876_p5 = scmp.ne.s32.totalorder %s4128_s3, %s2875_s28  ;;  %p2882_p10 = scmp.lt.u32.totalorder %s2875_s28, %s4128_s3 }
  0xf8   : > { %p2878_p7 = pnand %p2876_p5, %p3439_p8 }
  0xfa   : > { %p2879_p9 = pneg %p2878_p7 }
  0xfc   : > { %p2884_p11 = pnand %p2882_p10, %p2879_p9 }
  0xfe   : > { %2887 = shalt.err (!%p2884_p11)
}
  0xff   : > { %s2888_s22 = scalar_lea.vmem %s518_s21, 16  ;;  %s2895_s29 = scalar_lea.vmem %s518_s21, 32 }
 0x100   : > { %p2889_p12 = scmp.ne.s32.totalorder %s518_s21, %s2888_s22  ;;  %p2896_p1 = scmp.lt.s32.totalorder %s518_s21, %s518_s21 }
 0x101   : > { %p2897_p13 = scmp.lt.s32.totalorder %s2895_s29, %s2888_s22 }
 0x102   : > { %p2891_p4 = pnand %p2889_p12, %p3439_p8 }
 0x103   : > { %p2898_p0 = por %p2897_p13, %p2896_p1 }
 0x104   : > { %p2892_p3 = pneg %p2891_p4 }
 0x106   : > { %p2899_p2 = pnand %p2898_p0, %p2892_p3 }
 0x108   : > { %2902 = shalt.err (!%p2899_p2)
}
 0x109   : > { %2438 = dma.hbm_to_vmem [thread:$0]  (!%p3425_p6), %s4128_s3, 16, %s518_s21, [#allocation12]  }
 0x10a   : > { %s4129_s5 = sld [smem:[#allocation59_spill]] }
 0x110   : > { %s2903_s4 = scalar_lea.hbm %s4129_s5, 16 }
 0x111   : > { %p2904_p5 = scmp.ne.s32.totalorder %s4129_s5, %s2903_s4  ;;  %p2910_p10 = scmp.lt.u32.totalorder %s2903_s4, %s4129_s5 }
 0x113   : > { %p2906_p7 = pnand %p2904_p5, %p3439_p8 }
 0x115   : > { %p2907_p9 = pneg %p2906_p7 }
 0x117   : > { %p2912_p11 = pnand %p2910_p10, %p2907_p9 }
 0x119   : > { %2915 = shalt.err (!%p2912_p11)
}
 0x11a   : > { %s2916_s17 = scalar_lea.vmem %s542_s0, 16  ;;  %s2923_s21 = scalar_lea.vmem %s542_s0, 32 }
 0x11b   : > { %p2917_p12 = scmp.ne.s32.totalorder %s542_s0, %s2916_s17  ;;  %p2924_p1 = scmp.lt.s32.totalorder %s542_s0, %s542_s0 }
 0x11c   : > { %p2925_p13 = scmp.lt.s32.totalorder %s2923_s21, %s2916_s17 }
 0x11d   : > { %p2919_p4 = pnand %p2917_p12, %p3439_p8 }
 0x11e   : > { %p2926_p0 = por %p2925_p13, %p2924_p1 }
 0x11f   : > { %p2920_p3 = pneg %p2919_p4 }
 0x121   : > { %p2927_p2 = pnand %p2926_p0, %p2920_p3 }
 0x123   : > { %2930 = shalt.err (!%p2927_p2)
}
 0x124   : > { %2444 = dma.hbm_to_vmem [thread:$0]  (!%p3425_p6), %s4129_s5, 16, %s542_s0, [#allocation15]  }
 0x125   : > { %s3262_s27 = smov [#allocation19]   ;;  %s3263_s26 = smov [#allocation22]  }
 0x126   : > { %s565_s30 = sshll.u32 %s3262_s27, 4  ;;  %s589_s1 = sshll.u32 %s3263_s26, 4  ;;  %s566_s30 = int_to_ptr.vmem [resolvable:$true] %s565_s30  ;;  %s590_s1 = int_to_ptr.vmem [resolvable:$true] %s589_s1 }
 0x127   : > { %s2931_s18 = scalar_lea.hbm %s4075_s7, 16 }
 0x128   : > { %p2932_p5 = scmp.ne.s32.totalorder %s4075_s7, %s2931_s18  ;;  %p2938_p10 = scmp.lt.u32.totalorder %s2931_s18, %s4075_s7 }
 0x12a   : > { %p2934_p7 = pnand %p2932_p5, %p3439_p8 }
 0x12c   : > { %p2935_p9 = pneg %p2934_p7 }
 0x12e   : > { %p2940_p11 = pnand %p2938_p10, %p2935_p9 }
 0x130   : > { %2943 = shalt.err (!%p2940_p11)
}
 0x131   : > { %s2944_s0 = scalar_lea.vmem %s566_s30, 16  ;;  %s2951_s22 = scalar_lea.vmem %s566_s30, 32 }
 0x132   : > { %p2945_p12 = scmp.ne.s32.totalorder %s566_s30, %s2944_s0  ;;  %p2952_p1 = scmp.lt.s32.totalorder %s566_s30, %s566_s30 }
 0x133   : > { %p2953_p13 = scmp.lt.s32.totalorder %s2951_s22, %s2944_s0 }
 0x134   : > { %p2947_p4 = pnand %p2945_p12, %p3439_p8 }
 0x135   : > { %p2954_p0 = por %p2953_p13, %p2952_p1 }
 0x136   : > { %p2948_p3 = pneg %p2947_p4 }
 0x138   : > { %p2955_p2 = pnand %p2954_p0, %p2948_p3 }
 0x13a   : > { %2958 = shalt.err (!%p2955_p2)
}
 0x13b   : > { %2450 = dma.hbm_to_vmem [thread:$0]  (!%p3425_p6), %s4075_s7, 16, %s566_s30, [#allocation18]  }
 0x13c   : > { %s2959_s28 = scalar_lea.hbm %s4077_s9, 16 }
 0x13d   : > { %p2960_p5 = scmp.ne.s32.totalorder %s4077_s9, %s2959_s28  ;;  %p2966_p10 = scmp.lt.u32.totalorder %s2959_s28, %s4077_s9 }
 0x13f   : > { %p2962_p7 = pnand %p2960_p5, %p3439_p8 }
 0x141   : > { %p2963_p9 = pneg %p2962_p7 }
 0x143   : > { %p2968_p11 = pnand %p2966_p10, %p2963_p9 }
 0x145   : > { %2971 = shalt.err (!%p2968_p11)
}
 0x146   : > { %s2972_s21 = scalar_lea.vmem %s590_s1, 16  ;;  %s2979_s30 = scalar_lea.vmem %s590_s1, 32 }
 0x147   : > { %p2973_p12 = scmp.ne.s32.totalorder %s590_s1, %s2972_s21  ;;  %p2980_p1 = scmp.lt.s32.totalorder %s590_s1, %s590_s1 }
 0x148   : > { %p2981_p13 = scmp.lt.s32.totalorder %s2979_s30, %s2972_s21 }
 0x149   : > { %p2975_p4 = pnand %p2973_p12, %p3439_p8 }
 0x14a   : > { %p2982_p0 = por %p2981_p13, %p2980_p1 }
 0x14b   : > { %p2976_p3 = pneg %p2975_p4 }
 0x14d   : > { %p2983_p2 = pnand %p2982_p0, %p2976_p3 }
 0x14f   : > { %2986 = shalt.err (!%p2983_p2)
}
 0x150   : > { %2456 = dma.hbm_to_vmem [thread:$0]  (!%p3425_p6), %s4077_s9, 16, %s590_s1, [#allocation21]  }
 0x151   : > { %s3264_s29 = smov [#allocation25]   ;;  %s3265_s26 = smov [#allocation28]  }
 0x152   : > { %s613_s27 = sshll.u32 %s3264_s29, 4  ;;  %s635_s4 = sshll.u32 %s3265_s26, 4  ;;  %s614_s27 = int_to_ptr.vmem [resolvable:$true] %s613_s27  ;;  %s636_s4 = int_to_ptr.vmem [resolvable:$true] %s635_s4 }
 0x153   : > { %s2987_s20 = scalar_lea.hbm %s4079_s11, 16 }
 0x154   : > { %p2988_p5 = scmp.ne.s32.totalorder %s4079_s11, %s2987_s20  ;;  %p2994_p10 = scmp.lt.u32.totalorder %s2987_s20, %s4079_s11 }
 0x156   : > { %p2990_p7 = pnand %p2988_p5, %p3439_p8 }
 0x158   : > { %p2991_p9 = pneg %p2990_p7 }
 0x15a   : > { %p2996_p11 = pnand %p2994_p10, %p2991_p9 }
 0x15c   : > { %2999 = shalt.err (!%p2996_p11)
}
 0x15d   : > { %s3000_s1 = scalar_lea.vmem %s614_s27, 16  ;;  %s3007_s0 = scalar_lea.vmem %s614_s27, 32 }
 0x15e   : > { %p3001_p12 = scmp.ne.s32.totalorder %s614_s27, %s3000_s1  ;;  %p3008_p1 = scmp.lt.s32.totalorder %s614_s27, %s614_s27 }
 0x15f   : > { %p3009_p13 = scmp.lt.s32.totalorder %s3007_s0, %s3000_s1 }
 0x160   : > { %p3003_p4 = pnand %p3001_p12, %p3439_p8 }
 0x161   : > { %p3010_p0 = por %p3009_p13, %p3008_p1 }
 0x162   : > { %p3004_p3 = pneg %p3003_p4 }
 0x164   : > { %p3011_p2 = pnand %p3010_p0, %p3004_p3 }
 0x166   : > { %3014 = shalt.err (!%p3011_p2)
}
 0x167   : > { %2462 = dma.hbm_to_vmem [thread:$0]  (!%p3425_p6), %s4079_s11, 16, %s614_s27, [#allocation24]  }
 0x168   : > { %s3015_s18 = scalar_lea.hbm %s4081_s13, 16 }
 0x169   : > { %p3016_p5 = scmp.ne.s32.totalorder %s4081_s13, %s3015_s18  ;;  %p3022_p10 = scmp.lt.u32.totalorder %s3015_s18, %s4081_s13 }
 0x16b   : > { %p3018_p7 = pnand %p3016_p5, %p3439_p8 }
 0x16d   : > { %p3019_p9 = pneg %p3018_p7 }
 0x16f   : > { %p3024_p11 = pnand %p3022_p10, %p3019_p9 }
 0x171   : > { %3027 = shalt.err (!%p3024_p11)
}
 0x172   : > { %s3028_s30 = scalar_lea.vmem %s636_s4, 16  ;;  %s3035_s27 = scalar_lea.vmem %s636_s4, 32 }
 0x173   : > { %p3029_p12 = scmp.ne.s32.totalorder %s636_s4, %s3028_s30  ;;  %p3036_p1 = scmp.lt.s32.totalorder %s636_s4, %s636_s4 }
 0x174   : > { %p3037_p13 = scmp.lt.s32.totalorder %s3035_s27, %s3028_s30 }
 0x175   : > { %p3031_p4 = pnand %p3029_p12, %p3439_p8 }
 0x176   : > { %p3038_p0 = por %p3037_p13, %p3036_p1 }
 0x177   : > { %p3032_p3 = pneg %p3031_p4 }
 0x179   : > { %p3039_p2 = pnand %p3038_p0, %p3032_p3 }
 0x17b   : > { %3042 = shalt.err (!%p3039_p2)
}
 0x17c   : > { %2468 = dma.hbm_to_vmem [thread:$0]  (!%p3425_p6), %s4081_s13, 16, %s636_s4, [#allocation27]  }
 0x17d   : > { %s3266_s22 = smov [#allocation31]   ;;  %s3267_s26 = smov [#allocation34]  }
 0x17e   : > { %s663_s29 = sshll.u32 %s3266_s22, 4  ;;  %s690_s28 = sshll.u32 %s3267_s26, 4  ;;  %s664_s29 = int_to_ptr.vmem [resolvable:$true] %s663_s29  ;;  %s691_s28 = int_to_ptr.vmem [resolvable:$true] %s690_s28 }
 0x17f   : > { %s3043_s24 = scalar_lea.hbm %s4083_s15, 16 }
 0x180   : > { %p3044_p5 = scmp.ne.s32.totalorder %s4083_s15, %s3043_s24  ;;  %p3050_p10 = scmp.lt.u32.totalorder %s3043_s24, %s4083_s15 }
 0x182   : > { %p3046_p7 = pnand %p3044_p5, %p3439_p8 }
 0x184   : > { %p3047_p9 = pneg %p3046_p7 }
 0x186   : > { %p3052_p11 = pnand %p3050_p10, %p3047_p9 }
 0x188   : > { %3055 = shalt.err (!%p3052_p11)
}
 0x189   : > { %s3056_s4 = scalar_lea.vmem %s664_s29, 16  ;;  %s3063_s1 = scalar_lea.vmem %s664_s29, 32 }
 0x18a   : > { %p3057_p12 = scmp.ne.s32.totalorder %s664_s29, %s3056_s4  ;;  %p3064_p1 = scmp.lt.s32.totalorder %s664_s29, %s664_s29 }
 0x18b   : > { %p3065_p13 = scmp.lt.s32.totalorder %s3063_s1, %s3056_s4 }
 0x18c   : > { %p3059_p4 = pnand %p3057_p12, %p3439_p8 }
 0x18d   : > { %p3066_p0 = por %p3065_p13, %p3064_p1 }
 0x18e   : > { %p3060_p3 = pneg %p3059_p4 }
 0x190   : > { %p3067_p2 = pnand %p3066_p0, %p3060_p3 }
 0x192   : > { %3070 = shalt.err (!%p3067_p2)
}
 0x193   : > { %2474 = dma.hbm_to_vmem [thread:$0]  (!%p3425_p6), %s4083_s15, 16, %s664_s29, [#allocation30]  }
 0x194   : > { %s4130_s20 = sld [smem:[#allocation60_spill]] }
 0x19a   : > { %s3071_s24 = scalar_lea.hbm %s4130_s20, 16 }
 0x19b   : > { %p3072_p5 = scmp.ne.s32.totalorder %s4130_s20, %s3071_s24  ;;  %p3078_p10 = scmp.lt.u32.totalorder %s3071_s24, %s4130_s20 }
 0x19d   : > { %p3074_p7 = pnand %p3072_p5, %p3439_p8 }
 0x19f   : > { %p3075_p9 = pneg %p3074_p7 }
 0x1a1   : > { %p3080_p11 = pnand %p3078_p10, %p3075_p9 }
 0x1a3   : > { %3083 = shalt.err (!%p3080_p11)
}
 0x1a4   : > { %s3084_s4 = scalar_lea.vmem %s691_s28, 16  ;;  %s3091_s29 = scalar_lea.vmem %s691_s28, 32 }
 0x1a5   : > { %p3085_p12 = scmp.ne.s32.totalorder %s691_s28, %s3084_s4  ;;  %p3092_p1 = scmp.lt.s32.totalorder %s691_s28, %s691_s28 }
 0x1a6   : > { %p3093_p13 = scmp.lt.s32.totalorder %s3091_s29, %s3084_s4 }
 0x1a7   : > { %p3087_p4 = pnand %p3085_p12, %p3439_p8 }
 0x1a8   : > { %p3094_p0 = por %p3093_p13, %p3092_p1 }
 0x1a9   : > { %p3088_p3 = pneg %p3087_p4 }
 0x1ab   : > { %p3095_p2 = pnand %p3094_p0, %p3088_p3 }
 0x1ad   : > { %3098 = shalt.err (!%p3095_p2)
}
 0x1ae   : > { %s4131_s22 = sld [smem:[#allocation51_spill]]  ;;  %s4132_s26 = sld [smem:[#allocation49_spill]] }
 0x1af   : > { %s4133_s18 = sld [smem:[#allocation48_spill]]  ;;  %s4134_s23 = sld [smem:[#allocation47_spill]] }
 0x1b0   : > { %s4135_s24 = sld [smem:[#allocation52_spill]]  ;;  %s2119_s17 = sadd.s32 4294967294, %s3247_s19  }
 0x1b1   : > { %2480 = dma.hbm_to_vmem [thread:$0]  (!%p3425_p6), %s4130_s20, 16, %s691_s28, [#allocation33]  }
 0x1b2   : > { %p91_p7 = scmp.eq.s32.totalorder %s3247_s19, 0  ;;  %s4139_s4 = sadd.s32 4294967295, %s3247_s19  }
 0x1b3   : > { %p471_p12 = scmp.eq.s32.totalorder %s4139_s4, 1  ;;  %p477_p3 = scmp.eq.s32.totalorder %s2119_s17, 1 }
 0x1b4   : > { %s55_s21 = sadd.s32 1, %s4131_s22  ;;  %s83_s25 = sadd.s32 1, %s4132_s26 }
 0x1b5   : > { %p57_p8 = scmp.ge.s32.totalorder %s55_s21, 2  ;;  %p90_p5 = scmp.ne.s32.totalorder %s4132_s26, %s4133_s18 }
 0x1b6   : > { %p96_p9 = scmp.ne.s32.totalorder %s4133_s18, %s4134_s23  ;;  %p4137_p11 = scmp.ne.s32.totalorder %s4135_s24, 0 }
 0x1b7   : > { %s4161_s21 = smov (%p57_p8, %s55_s21), 0  ;;  %p3785_p10 = por %p91_p7, %p90_p5 }
 0x1b8   : > { %p3791_p6 = por %p4137_p11, %p96_p9  ;;  %s80_s27 = ssub.s32 %s4131_s22, %s4161_s21 }
 0x1b9   : > { %p81_p4 = scmp.eq.s32.totalorder %s80_s27, 0  ;;  %p3799_p1 = por %p471_p12, %p90_p5 }
 0x1ba   : > { %p2506_p13 = scmp.lt.s32.totalorder %s3247_s19, 2  ;;  %p3807_p0 = por %p477_p3, %p96_p9 }
 0x1bb   : > { %s4140_s29 = scalar_select %p3799_p1, 1, 0 }
 0x1bc   : > { %s3805_s1 = scalar_select %p81_p4, %s4132_s26, %s83_s25  }
 0x1bd   : > { %s4141_s0 = scalar_select %p3807_p0, 1, 0 }
 0x1be   : > { %s701_s18 = sand.u32 1, %s4132_s26   ;;  %s2140_s24 = sshll.u32 %s4131_s22, 7 }
 0x1bf   : > { %s2139_s23 = sshll.u32 %s701_s18, 3  ;;  %s4142_s5 = sld [smem:[#allocation55_spill]] }
 0x1c0   : > { %s705_s17 = scalar_lea.vmem [#allocation10], %s2139_s23  ;;  %p3822_p2 = pnand %p2506_p13, %p3785_p10 }
 0x1c1   : > { %s712_s27 = sshll.u32 %s705_s17, 4  ;;  %s702_s22 = scalar_lea.sflag [#allocation7], %s701_s18  ;;  %s3818_s27 = int_to_ptr.vmem [resolvable:$true] %s712_s27 }
 0x1c2   : > { %p3101_p5 = pneg %p3822_p2 }
 0x1c5   : > { %s3816_s4 = scalar_lea.hbm %s4142_s5, %s2140_s24  ;;  %s3104_s23 = scalar_lea.hbm %s4142_s5, 256 }
 0x1c6   : > { %s3099_s26 = scalar_lea.hbm %s3816_s4, 128  ;;  %p3105_p10 = scmp.lt.u32.totalorder %s3816_s4, %s4142_s5 }
 0x1c7   : > { %p3100_p8 = scmp.ne.s32.totalorder %s3816_s4, %s3099_s26  ;;  %p3106_p11 = scmp.lt.u32.totalorder %s3104_s23, %s3099_s26 }
 0x1c8   : > { %p3108_p4 = scmp.lt.u32.totalorder %s3099_s26, %s3816_s4 }
 0x1c9   : > { %p3102_p7 = pnand %p3101_p5, %p3100_p8  ;;  %p3107_p12 = por %p3106_p11, %p3105_p10 }
 0x1cb   : > { %p3103_p9 = pneg %p3102_p7  ;;  %p3109_p3 = por %p3108_p4, %p3107_p12 }
 0x1cd   : > { %p3110_p13 = pnand %p3109_p3, %p3103_p9 }
 0x1cf   : > { %3113 = shalt.err (!%p3110_p13)
}
 0x1d0   : > { %s3114_s18 = scalar_lea.vmem %s3818_s27, 128  ;;  %s3268_s17 = smov [#allocation10]  }
 0x1d1   : > { %p3115_p8 = scmp.ne.s32.totalorder %s3818_s27, %s3114_s18  ;;  %s3119_s3 = sshll.u32 %s3268_s17, 4  ;;  %s3120_s3 = int_to_ptr.vmem [resolvable:$false] %s3119_s3 }
 0x1d2   : > { %s3121_s2 = scalar_lea.vmem %s3120_s3, 256  ;;  %p3122_p1 = scmp.lt.s32.totalorder %s3818_s27, %s3120_s3 }
 0x1d3   : > { %p3117_p7 = pnand %p3115_p8, %p3101_p5  ;;  %p3123_p10 = scmp.lt.s32.totalorder %s3121_s2, %s3114_s18 }
 0x1d5   : > { %p3118_p0 = pneg %p3117_p7  ;;  %p3124_p11 = por %p3123_p10, %p3122_p1 }
 0x1d7   : > { %p3125_p12 = pnand %p3124_p11, %p3118_p0 }
 0x1d9   : > { %3128 = shalt.err (!%p3125_p12)
}
 0x1da   : > { %2484 = dma.hbm_to_vmem [thread:$0]  (!%p3822_p2), %s3816_s4, 128, %s3818_s27, %s702_s22  }
 0x1db   : > { %s4144_s26 = sld [smem:[#allocation53_spill]] }
 0x1e1   : > { %p4145_p9 = scmp.ne.s32.totalorder %s4144_s26, 0 }
 0x1e2   : > { %s4146_s23 = sld [smem:[#allocation52_spill]] (!%p4145_p9) }
 0x1e3   : > { %721 = sbr.rel (%p4145_p9) target bundleno = 2908 (0xb5c), region = 92 }
 0x1e8   : > { %p4147_p5 = scmp.ne.s32.totalorder (!%p4145_p9), %s4146_s23, 0 }
 0x1ea   : > { %3182 = dma.done.wait (%p4147_p5), [#allocation9], 16  }
 0x1eb   : > { %3184 = vsyncadd (%p4147_p5), [#allocation9], 4294967280  ;;  %s4148_s30 = sld [smem:[#allocation48_spill]] }
 0x1f1   : > { %s3858_s24 = sand.u32 1, %s4148_s30  }
 0x1f2   : > { %s2143_s25 = sshll.u32 %s3858_s24, 3  ;;  %s728_s18 = scalar_lea.sflag [#allocation7], %s3858_s24 }
 0x1f3   : > { %s731_s4 = scalar_lea.vmem [#allocation10], %s2143_s25 }
 0x1f4   : > { %3186 = dma.done.wait (%p3791_p6), %s728_s18, 128  }
 0x1f5   : > { %3188 = vsyncadd (%p3791_p6), %s728_s18, 4294967168 }
 0x1f6   : > { %3190 = dma.done.wait (%p4147_p5), [#allocation12], 32  }
 0x1f7   : > { %3192 = vsyncadd (%p4147_p5), [#allocation12], 4294967264 }
 0x1f8   : > { %3194 = dma.done.wait (%p4147_p5), [#allocation15], 272  }
 0x1f9   : > { %3196 = vsyncadd (%p4147_p5), [#allocation15], 4294967024 }
 0x1fa   : > { %3198 = dma.done.wait (%p4147_p5), [#allocation18], 272  }
 0x1fb   : > { %3200 = vsyncadd (%p4147_p5), [#allocation18], 4294967024 }
 0x1fc   : > { %3202 = dma.done.wait (%p4147_p5), [#allocation21], 272  }
 0x1fd   : > { %3204 = vsyncadd (%p4147_p5), [#allocation21], 4294967024 }
 0x1fe   : > { %3206 = dma.done.wait (%p4147_p5), [#allocation24], 272  }
 0x1ff   : > { %3208 = vsyncadd (%p4147_p5), [#allocation24], 4294967024 }
 0x200   : > { %3210 = dma.done.wait (%p4147_p5), [#allocation27], 32  }
 0x201   : > { %3212 = vsyncadd (%p4147_p5), [#allocation27], 4294967264 }
 0x202   : > { %3214 = dma.done.wait (%p4147_p5), [#allocation30], 272  }
 0x203   : > { %3216 = vsyncadd (%p4147_p5), [#allocation30], 4294967024 }
 0x204   : > { %3218 = dma.done.wait (%p4147_p5), [#allocation33], 1040  }
 0x205   : > { %3220 = vsyncadd (%p4147_p5), [#allocation33], 4294966256 }
 0x206   : > { %800 = sfence }
 0x207   : > { %v3900_v0 = vld [vmem:[%s731_s4] sm:$0xff]  ;;  %vm858_vm0 = vcmask 261120   ;;  %v2600_v7 = vld [vmem:[#allocation14] sm:$0xff]   ;;  %v3269_v8 = vmov 0.0   ;;  %vm3270_vm1 = vmmov 0   ;;  %vm1094_vm2 = vcmask 64512  }
 0x208   : > { %v859_v1 = vsel %vm858_vm0, %v3900_v0, 0.0  ;;  %2249 = vmatprep.subr.bf16.mxu0 %v3269_v8  ;;  %1663 = vst.msk [vmem:[#allocation5] sm:$0xff] %vm858_vm0, %v3269_v8  ;;  %2253 = vmatprep.mubr.msk.bf16.mxu0 %vm3270_vm1, %v3269_v8  ;;  %v2601_v9 = vld [vmem:[#allocation14 + $0x8] sm:$0xff]   ;;  %v2161_v14 = vld [vmem:[#allocation11] ss:$0 sm:$0xff]  ;;  %v2602_v19 = vld [vmem:[#allocation17] sm:$0xff]   ;;  %v1080_v56 = vlaneseq }
 0x209   : > { %860 = vadd.xlane.f32.xlu0 %v859_v1  ;;  %2250 = vmatpush3.bf16.msra.mxu0 %v2600_v7  ;;  %v2162_v16 = vld [vmem:[#allocation13] ss:$0 sm:$0xff]  ;;  %v2604_v22 = vld [vmem:[#allocation20] sm:$0xff]   ;;  %v2605_v23 = vld [vmem:[#allocation20 + $0x8] sm:$0xff]   ;;  %s3271_s28 = smov 112   ;;  %s3272_s27 = smov 120  }
 0x20a   : > { %2273 = vmatprep.subr.bf16.mxu1 %v3269_v8  ;;  %2251 = vmatprep.subr.bf16.mxu0 %v3269_v8  ;;  %v2603_v21 = vld [vmem:[#allocation17 + $0x8] sm:$0xff]   ;;  %v2167_v28 = vld [vmem:[#allocation19] ss:$0 sm:$0xff]  ;;  %v2163_v29 = vld [vmem:[#allocation16] ss:$0 sm:$0xff]  ;;  %vm1155_vm3 = vcmask 1043456  }
 0x20b   : > { %2275 = vmatprep.mubr.msk.bf16.mxu1 %vm3270_vm1, %v3269_v8  ;;  %v2171_v38 = vld [vmem:[#allocation22] ss:$0 sm:$0xff]  ;;  %s3273_s22 = smov 104   ;;  %v1081_v57 = vshrl.u32 %v1080_v56, 7  ;;  %v1083_v58 = vand.u32 127, %v1080_v56  ;;  %s1091_s17 = sld [smem:[#allocation6]] }
 0x20c   : > { %s2177_s3 = sld [smem:[#allocation6 + $0x1]]  ;;  %s2180_s2 = sld [smem:[#allocation6 + $0x2]]  ;;  %vm1321_vm5 = vcmask 130112   ;;  %vm1440_vm6 = vcmask 195712   ;;  %vm1559_vm7 = vcmask 261312   ;;  %vm1661_vm8 = vcmask 257024  }
 0x20d   : > { %2252 = vmatpush3.bf16.msra.mxu0 %v2601_v9  ;;  %v1085_v59 = vsub.s32 %v1083_v58, %v1081_v57  ;;  %vm1084_vm4 = vcmp.gt.s32.totalorder %v1083_v58, %v1081_v57  ;;  %s2183_s26 = sld [smem:[#allocation6 + $0x3]]  ;;  %s3274_s23 = smov 8  }
 0x20e   : > { %2257 = vmatprep.subr.bf16.mxu0 %v3269_v8  ;;  %s3275_s30 = smov 16   ;;  %s3276_s18 = smov 24  }
 0x20f   : > { %v1086_v60 = vcvt.s32.f32 %v1085_v59  ;;  %s4149_s4 = sld [smem:[#allocation50_spill]]  ;;  %p4151_p1 = scmp.ne.s32.totalorder %s4140_s29, 0 }
 0x211   : > { %v1087_v61 = vsel %vm1084_vm4, -1e+09, %v1086_v60  ;;  %v1092_v62 = vstv %s1091_s17 }
 0x212   : > { %v1093_v63 = vmul.f32 %v1092_v62, %v1087_v61  ;;  %v1202_v7 = vstv %s2177_s3 }
 0x213   : > { %v1203_v9 = vmul.f32 %v1202_v7, %v1087_v61 }
 0x296   : > { %v861_v2 = vpop.xlane.xlu0 %860 }
 0x297   : > { %v863_v3 = vmul.f32 0.03125, %v861_v2 }
 0x299   : > { %v864_v4 = vsub.f32 %v3900_v0, %v863_v3 }
 0x29b   : > { %v865_v5 = vmul.f32 %v864_v4, %v864_v4 }
 0x29d   : > { %v866_v6 = vsel %vm858_vm0, %v865_v5, 0.0 }
 0x29e   : > { %867 = vadd.xlane.f32.xlu0 %v866_v6 }
 0x32b   : > { %v868_v10 = vpop.xlane.xlu0 %867 }
 0x32c   : > { %v869_v11 = vmul.f32 0.03125, %v868_v10 }
 0x32e   : > { %v870_v12 = vadd.f32 1e-05, %v869_v11 }
 0x330   : > { %2618 = vrsqrt.f32 %v870_v12 }
 0x33a   : > { %v2619_v13 = vpop.eup %2618 }
 0x33b   : > { %v872_v15 = vmul.f32 %v2619_v13, %v864_v4 }
 0x33d   : > { %v879_v17 = vmul.f32 %v2161_v14, %v872_v15  ;;  %v1324_v14 = vstv %s2180_s2  ;;  %s4150_s2 = sld [smem:[#allocation61_spill]] }
 0x33f   : > { %v886_v18 = vadd.f32 %v2162_v16, %v879_v17  ;;  %v1325_v17 = vmul.f32 %v1324_v14, %v1087_v61 }
 0x341   : > { %v887_v20 = vpack.c.bf16 %v886_v18, %v886_v18 }
 0x343   : > { %2254 = vmatmul.mubr.msk.bf16.vlgmr.msra.gmra.mrb[0].mxu0 %vm858_vm0, %v887_v20 }
 0x344   : > { %2258 = vmatpush3.bf16.msra.mxu0 %v2602_v19  ;;  %2261 = vmatprep.mubr.msk.bf16.mxu0 %vm3270_vm1, %v3269_v8 }
 0x345   : > { %2259 = vmatprep.subr.bf16.mxu0 %v3269_v8 }
 0x348   : > { %2260 = vmatpush3.bf16.msra.mxu0 %v2603_v21 }
 0x349   : > { %2265 = vmatprep.subr.bf16.mxu0 %v3269_v8 }
 0x34b   : > { %2262 = vmatmul.mubr.msk.bf16.vlgmr.msra.gmra.mrb[4].mxu0 %vm858_vm0, %v887_v20 }
 0x34c   : > { %2266 = vmatpush3.bf16.msra.mxu0 %v2604_v22  ;;  %2269 = vmatprep.mubr.msk.bf16.mxu0 %vm3270_vm1, %v3269_v8  ;;  %v1443_v22 = vstv %s2183_s26 }
 0x34d   : > { %2267 = vmatprep.subr.bf16.mxu0 %v3269_v8 }
 0x350   : > { %2268 = vmatpush3.bf16.msra.mxu0 %v2605_v23 }
 0x351   : > { %2279 = vmatprep.subr.bf16.mxu0 %v3269_v8 }
 0x353   : > { %2270 = vmatmul.mubr.msk.bf16.vlgmr.msra.gmra.mrb[8].mxu0 %vm858_vm0, %v887_v20 }
 0x354   : > { %2281 = vmatprep.mubr.msk.bf16.mxu0 %vm3270_vm1, %v3269_v8 }
 0x416   : > { %v948_v24 = vpop.f32.mrb[0].mxu0 }
 0x417   : > { %v2255_v25 = vpop.f32.mrb[1].mxu0  ;;  %v949_v34 = vadd.f32 %v2163_v29, %v948_v24 }
 0x418   : > { %v951_v26 = vpop.f32.mrb[2].mxu0  ;;  %v1444_v25 = vmul.f32 %v1443_v22, %v1087_v61 }
 0x419   : > { %v2256_v27 = vpop.f32.mrb[3].mxu0  ;;  %v1088_v39 = vpack.c.bf16 %v949_v34, %v949_v34 }
 0x41e   : > { %v1011_v30 = vpop.f32.mrb[4].mxu0 }
 0x41f   : > { %v1012_v31 = vadd.f32 %v2167_v28, %v1011_v30  ;;  %v2263_v32 = vpop.f32.mrb[5].mxu0 }
 0x420   : > { %v1014_v33 = vpop.f32.mrb[6].mxu0 }
 0x421   : > { %v1089_v35 = vpack.c.bf16 %v1012_v31, %v1012_v31  ;;  %v2264_v36 = vpop.f32.mrb[7].mxu0 }
 0x423   : > { %1328 = vrot.lane.b32.xlu0 %v1089_v35, %s3271_s28  ;;  %1208 = vrot.lane.b32.xlu1 %v1089_v35, %s3272_s27  ;;  %v1099_v37 = vsel %vm1094_vm2, %v1089_v35, 0 }
 0x424   : > { %2274 = vmatpush3.bf16.xpose.msra.mxu1 %v1099_v37 }
 0x425   : > { %2285 = vmatprep.subr.bf16.mxu1 %v3269_v8 }
 0x426   : > { %v1074_v40 = vpop.f32.mrb[8].mxu0 }
 0x427   : > { %v1075_v41 = vadd.f32 %v2171_v38, %v1074_v40  ;;  %1205 = vrot.lane.b32.xlu1 %v1088_v39, %s3272_s27  ;;  %v2271_v42 = vpop.f32.mrb[9].mxu0 }
 0x428   : > { %v1077_v43 = vpop.f32.mrb[10].mxu0 }
 0x429   : > { %v3934_v44 = vpack.c.bf16 %v1075_v41, %v1075_v41  ;;  %v2272_v45 = vpop.f32.mrb[11].mxu0 }
 0x42b   : > { %1326 = vrot.lane.b32.xlu1 %v1088_v39, %s3271_s28  ;;  %2276 = vmatmul.mubr.msk.bf16.vlgmr.msra.gmra.mrb[0].mxu1 %vm1094_vm2, %v1088_v39  ;;  %v1157_v46 = vsel %vm1155_vm3, %v3934_v44, 0 }
 0x42c   : > { %2280 = vmatpush3.bf16.msra.mxu0 %v1157_v46  ;;  %2287 = vmatprep.mubr.msk.bf16.mxu1 %vm3270_vm1, %v3269_v8 }
 0x42d   : > { %2291 = vmatprep.subr.bf16.mxu0 %v3269_v8 }
 0x42f   : > { %1447 = vrot.lane.b32.xlu1 %v1089_v35, %s3273_s22 }
 0x433   : > { %1445 = vrot.lane.b32.xlu1 %v1088_v39, %s3273_s22 }
 0x495   : > { %v1209_v47 = vpop.permute.xlu1 %1208  ;;  %v1329_v50 = vpop.permute.xlu0 %1328 }
 0x496   : > { %v1214_v48 = vsel %vm1094_vm2, %v1209_v47, 0  ;;  %v1334_v52 = vsel %vm1094_vm2, %v1329_v50, 0 }
 0x497   : > { %2286 = vmatpush3.bf16.xpose.msra.mxu1 %v1214_v48 }
 0x498   : > { %2297 = vmatprep.subr.bf16.mxu1 %v3269_v8 }
 0x499   : > { %v1206_v49 = vpop.permute.xlu1 %1205 }
 0x49d   : > { %v1327_v51 = vpop.permute.xlu1 %1326 }
 0x49e   : > { %2288 = vmatmul.mubr.msk.bf16.vlgmr.msra.gmra.mrb[4].mxu1 %vm1094_vm2, %v1206_v49 }
 0x49f   : > { %2298 = vmatpush3.bf16.xpose.msra.mxu1 %v1334_v52  ;;  %2299 = vmatprep.mubr.msk.bf16.mxu1 %vm3270_vm1, %v3269_v8 }
 0x4a0   : > { %2309 = vmatprep.subr.bf16.mxu1 %v3269_v8 }
 0x4a1   : > { %v1448_v53 = vpop.permute.xlu1 %1447 }
 0x4a2   : > { %v1453_v54 = vsel %vm1094_vm2, %v1448_v53, 0 }
 0x4a5   : > { %v1446_v55 = vpop.permute.xlu1 %1445 }
 0x4a6   : > { %2300 = vmatmul.mubr.msk.bf16.vlgmr.msra.gmra.mrb[8].mxu1 %vm1094_vm2, %v1327_v51 }
 0x4a7   : > { %2310 = vmatpush3.bf16.xpose.msra.mxu1 %v1453_v54  ;;  %2311 = vmatprep.mubr.msk.bf16.mxu1 %vm3270_vm1, %v3269_v8 }
 0x4a8   : > { %2321 = vmatprep.subr.bf16.mxu1 %v3269_v8 }
 0x4ae   : > { %2312 = vmatmul.mubr.msk.bf16.vlgmr.msra.gmra.mrb[12].mxu1 %vm1094_vm2, %v1446_v55 }
 0x4af   : > { %2325 = vmatprep.mubr.msk.bf16.mxu1 %vm3270_vm1, %v3269_v8 }
 0x4fe   : > { %v1135_v1 = vpop.f32.mrb[0].mxu1 }
 0x4ff   : > { %v1136_v2 = vadd.f32 %v1135_v1, %v1093_v63  ;;  %v2277_v3 = vpop.f32.mrb[1].mxu1 }
 0x500   : > { %v1138_v4 = vpop.f32.mrb[2].mxu1 }
 0x501   : > { %v2278_v5 = vpop.f32.mrb[3].mxu1  ;;  %v1141_v6 = vsel %vm1094_vm2, %v1136_v2, -inf }
 0x502   : > { %1142 = vmax.xlane.f32.xlu1 %v1141_v6 }
 0x513   : > { %1387 = vrot.lane.b32.xlu1 %v3934_v44, %s3271_s28  ;;  %s2206_s28 = sshll.u32 %s4149_s4, 7 }
 0x514   : > { %s4018_s26 = scalar_lea.hbm %s4150_s2, %s2206_s28 }
 0x571   : > { %v1250_v10 = vpop.f32.mrb[4].mxu1 }
 0x572   : > { %v1251_v11 = vadd.f32 %v1250_v10, %v1203_v9  ;;  %v2289_v12 = vpop.f32.mrb[5].mxu1 }
 0x573   : > { %v1253_v13 = vpop.f32.mrb[6].mxu1 }
 0x574   : > { %v2290_v15 = vpop.f32.mrb[7].mxu1  ;;  %v1256_v16 = vsel %vm1094_vm2, %v1251_v11, -inf }
 0x575   : > { %1257 = vmax.xlane.f32.xlu0 %v1256_v16  ;;  %v2606_v16 = vld [vmem:[#allocation23] sm:$0xff]  }
 0x576   : > { %2322 = vmatpush3.bf16.msra.mxu1 %v2606_v16 }
 0x577   : > { %2323 = vmatprep.subr.bf16.mxu1 %v3269_v8 }
 0x579   : > { %v1370_v18 = vpop.f32.mrb[8].mxu1 }
 0x57a   : > { %v1371_v19 = vadd.f32 %v1370_v18, %v1325_v17  ;;  %v2301_v20 = vpop.f32.mrb[9].mxu1 }
 0x57b   : > { %v1373_v21 = vpop.f32.mrb[10].mxu1 }
 0x57c   : > { %v2302_v23 = vpop.f32.mrb[11].mxu1  ;;  %v1376_v24 = vsel %vm1094_vm2, %v1371_v19, -inf }
 0x57d   : > { %1377 = vmax.xlane.f32.xlu1 %v1376_v24 }
 0x581   : > { %v1489_v26 = vpop.f32.mrb[12].mxu1 }
 0x582   : > { %v1490_v27 = vadd.f32 %v1489_v26, %v1444_v25  ;;  %v2313_v28 = vpop.f32.mrb[13].mxu1 }
 0x583   : > { %v1492_v29 = vpop.f32.mrb[14].mxu1 }
 0x584   : > { %v2314_v30 = vpop.f32.mrb[15].mxu1  ;;  %v1495_v31 = vsel %vm1094_vm2, %v1490_v27, -inf }
 0x585   : > { %1496 = vmax.xlane.f32.xlu1 %v1495_v31 }
 0x58b   : > { %1268 = vrot.lane.b32.xlu0 %v3934_v44, %s3272_s27  ;;  %s848_s27 = scalar_lea.vmem [#allocation35], %s2143_s25  ;;  %s3277_s25 = smov [#allocation35]  }
 0x58f   : > { %v1143_v32 = vpop.xlane.xlu1 %1142 }
 0x590   : > { %v1144_v33 = vsub.f32 %v1136_v2, %v1143_v32 }
 0x592   : > { %v1145_v34 = vmul.f32 1.442695, %v1144_v33 }
 0x593   : > { %v1388_v40 = vpop.permute.xlu1 %1387 }
 0x594   : > { %2620 = vpow2.f32 %v1145_v34  ;;  %v1393_v51 = vsel %vm1155_vm3, %v1388_v40, 0 }
 0x596   : > { %1506 = vrot.lane.b32.xlu1 %v3934_v44, %s3273_s22  ;;  %s1870_s22 = sshll.u32 %s848_s27, 4  ;;  %s4020_s22 = int_to_ptr.vmem [resolvable:$true] %s1870_s22 }
 0x59e   : > { %v2621_v35 = vpop.eup %2620 }
 0x59f   : > { %v1151_v36 = vpack.c.bf16 %v2621_v35, %v2621_v35  ;;  %v1147_v61 = vsel %vm1094_vm2, %v2621_v35, 0.0  ;;  %v2186_v35 = vld [vmem:[#allocation25] ss:$0 sm:$0xff] }
 0x5a1   : > { %2282 = vmatmul.mubr.msk.bf16.vlgmr.msra.gmra.mrb[12].mxu0 %vm1094_vm2, %v1151_v36 }
 0x5a2   : > { %2293 = vmatprep.mubr.msk.bf16.mxu0 %vm3270_vm1, %v3269_v8 }
 0x602   : > { %v1258_v37 = vpop.xlane.xlu0 %1257 }
 0x603   : > { %v1259_v38 = vsub.f32 %v1251_v11, %v1258_v37 }
 0x605   : > { %v1260_v39 = vmul.f32 1.442695, %v1259_v38 }
 0x606   : > { %v1269_v41 = vpop.permute.xlu0 %1268 }
 0x607   : > { %2622 = vpow2.f32 %v1260_v39  ;;  %v1274_v42 = vsel %vm1155_vm3, %v1269_v41, 0 }
 0x608   : > { %2292 = vmatpush3.bf16.msra.mxu0 %v1274_v42 }
 0x609   : > { %2303 = vmatprep.subr.bf16.mxu0 %v3269_v8 }
 0x60a   : > { %v1378_v43 = vpop.xlane.xlu1 %1377 }
 0x60b   : > { %v1379_v44 = vsub.f32 %v1371_v19, %v1378_v43  ;;  %v2607_v19 = vld [vmem:[#allocation23 + $0x8] sm:$0xff]  }
 0x60c   : > { %2324 = vmatpush3.bf16.msra.mxu1 %v2607_v19 }
 0x60d   : > { %v1380_v45 = vmul.f32 1.442695, %v1379_v44  ;;  %2337 = vmatprep.subr.bf16.mxu1 %v3269_v8 }
 0x60f   : > { %2624 = vpow2.f32 %v1380_v45 }
 0x611   : > { %v2623_v46 = vpop.eup %2622 }
 0x612   : > { %v1497_v47 = vpop.xlane.xlu1 %1496  ;;  %v1262_v48 = vsel %vm1094_vm2, %v2623_v46, 0.0  ;;  %v1266_v49 = vpack.c.bf16 %v2623_v46, %v2623_v46 }
 0x613   : > { %v1498_v50 = vsub.f32 %v1490_v27, %v1497_v47  ;;  %1263 = vadd.xlane.f32.xlu0 %v1262_v48  ;;  %v2608_v48 = vld [vmem:[#allocation29] sm:$0xff]  }
 0x614   : > { %2294 = vmatmul.mubr.msk.bf16.vlgmr.msra.gmra.mrb[16].mxu0 %vm1094_vm2, %v1266_v49  ;;  %v2609_v49 = vld [vmem:[#allocation29 + $0x8] sm:$0xff]  }
 0x615   : > { %v1499_v52 = vmul.f32 1.442695, %v1498_v50  ;;  %2304 = vmatpush3.bf16.msra.mxu0 %v1393_v51  ;;  %2305 = vmatprep.mubr.msk.bf16.mxu0 %vm3270_vm1, %v3269_v8  ;;  %v2611_v50 = vld [vmem:[#allocation32 + $0x8] sm:$0xff]   ;;  %v2612_v51 = vld [vmem:[#allocation32 + $0x10] sm:$0xff]  }
 0x616   : > { %2315 = vmatprep.subr.bf16.mxu0 %v3269_v8  ;;  %v1507_v54 = vpop.permute.xlu1 %1506 }
 0x617   : > { %2626 = vpow2.f32 %v1499_v52  ;;  %v1512_v57 = vsel %vm1155_vm3, %v1507_v54, 0  ;;  %v2613_v52 = vld [vmem:[#allocation32 + $0x18] sm:$0xff]   ;;  %v2615_v54 = vld [vmem:[#allocation32 + $0x28] sm:$0xff]  }
 0x619   : > { %v2625_v53 = vpop.eup %2624 }
 0x61a   : > { %v1382_v55 = vsel %vm1094_vm2, %v2625_v53, 0.0  ;;  %v1386_v56 = vpack.c.bf16 %v2625_v53, %v2625_v53  ;;  %v2614_v53 = vld [vmem:[#allocation32 + $0x20] sm:$0xff]  }
 0x61b   : > { %1383 = vadd.xlane.f32.xlu1 %v1382_v55 }
 0x61c   : > { %2306 = vmatmul.mubr.msk.bf16.vlgmr.msra.gmra.mrb[20].mxu0 %vm1094_vm2, %v1386_v56 }
 0x61d   : > { %2316 = vmatpush3.bf16.msra.mxu0 %v1512_v57  ;;  %2317 = vmatprep.mubr.msk.bf16.mxu0 %vm3270_vm1, %v3269_v8 }
 0x61e   : > { %2329 = vmatprep.subr.bf16.mxu0 %v3269_v8 }
 0x621   : > { %v2627_v58 = vpop.eup %2626 }
 0x622   : > { %v1501_v59 = vsel %vm1094_vm2, %v2627_v58, 0.0  ;;  %v1505_v60 = vpack.c.bf16 %v2627_v58, %v2627_v58 }
 0x623   : > { %1502 = vadd.xlane.f32.xlu0 %v1501_v59  ;;  %v2190_v59 = vld [vmem:[#allocation26] ss:$0 sm:$0xff] }
 0x624   : > { %2318 = vmatmul.mubr.msk.bf16.vlgmr.msra.gmra.mrb[24].mxu0 %vm1094_vm2, %v1505_v60 }
 0x625   : > { %2333 = vmatprep.mubr.msk.bf16.mxu0 %vm3270_vm1, %v3269_v8  ;;  %2330 = vmatpush3.bf16.msra.mxu0 %v2608_v48 }
 0x626   : > { %2331 = vmatprep.subr.bf16.mxu0 %v3269_v8 }
 0x627   : > { %1148 = vadd.xlane.f32.xlu0 %v1147_v61  ;;  %v2191_v61 = vld [vmem:[#allocation28] ss:$0 sm:$0xff] }
 0x629   : > { %2332 = vmatpush3.bf16.msra.mxu0 %v2609_v49 }
 0x674   : > { %v1193_v62 = vpop.f32.mrb[12].mxu0 }
 0x675   : > { %v2283_v63 = vpop.f32.mrb[13].mxu0 }
 0x676   : > { %v1196_v1 = vpop.f32.mrb[14].mxu0 }
 0x677   : > { %v2284_v2 = vpop.f32.mrb[15].mxu0 }
 0x6a0   : > { %v1264_v3 = vpop.xlane.xlu0 %1263 }
 0x6a8   : > { %v1384_v9 = vpop.xlane.xlu1 %1383 }
 0x6b0   : > { %v1503_v4 = vpop.xlane.xlu0 %1502 }
 0x6b4   : > { %v1149_v5 = vpop.xlane.xlu0 %1148 }
 0x6b5   : > { %2628 = vrcp.f32 %v1149_v5  ;;  %v2192_v5 = vld [vmem:[#allocation31] ss:$0 sm:$0xff] }
 0x6b6   : > { %2630 = vrcp.f32 %v1264_v3  ;;  %v2616_v3 = vld [vmem:[#allocation32 + $0x30] sm:$0xff]  }
 0x6b7   : > { %2632 = vrcp.f32 %v1384_v9 }
 0x6b8   : > { %2634 = vrcp.f32 %v1503_v4  ;;  %v2617_v4 = vld [vmem:[#allocation32 + $0x38] sm:$0xff]  }
 0x6bf   : > { %v2629_v6 = vpop.eup %2628 }
 0x6c0   : > { %v1199_v7 = vmul.f32 %v2629_v6, %v1193_v62  ;;  %v2631_v10 = vpop.eup %2630 }
 0x6c1   : > { %v2633_v17 = vpop.eup %2632 }
 0x6c2   : > { %1200 = vst.msk [vmem:[#allocation2] sm:$0xff] %vm1094_vm2, %v1199_v7  ;;  %v2635_v24 = vpop.eup %2634 }
 0x6e7   : > { %v1310_v11 = vpop.f32.mrb[16].mxu0 }
 0x6e8   : > { %v1316_v12 = vmul.f32 %v2631_v10, %v1310_v11  ;;  %v2295_v13 = vpop.f32.mrb[17].mxu0 }
 0x6e9   : > { %v1313_v14 = vpop.f32.mrb[18].mxu0 }
 0x6ea   : > { %1318 = vrot.lane.b32.xlu1 %v1316_v12, %s3274_s23  ;;  %v2296_v15 = vpop.f32.mrb[19].mxu0  ;;  %v1733_v14 = vld [vmem:[#allocation5] sm:$0xff]  ;;  %s1857_s23 = scalar_lea.sflag [#allocation8], %s3858_s24 }
 0x6ef   : > { %v1429_v18 = vpop.f32.mrb[20].mxu0 }
 0x6f0   : > { %v1435_v20 = vmul.f32 %v2633_v17, %v1429_v18  ;;  %v2307_v21 = vpop.f32.mrb[21].mxu0 }
 0x6f1   : > { %v1432_v22 = vpop.f32.mrb[22].mxu0  ;;  %v2204_v21 = vld [vmem:[#allocation34] ss:$0 sm:$0xff] }
 0x6f2   : > { %1437 = vrot.lane.b32.xlu0 %v1435_v20, %s3275_s30  ;;  %v2308_v23 = vpop.f32.mrb[23].mxu0  ;;  %s3129_s30 = scalar_lea.vmem %s4020_s22, 128 }
 0x6f3   : > { %p3130_p6 = scmp.ne.s32.totalorder %s4020_s22, %s3129_s30 }
 0x6f5   : > { %p3131_p0 = pnand %p3130_p6, %p4151_p1 }
 0x6f7   : > { %v1548_v25 = vpop.f32.mrb[24].mxu0  ;;  %p3132_p2 = pneg %p3131_p0 }
 0x6f8   : > { %v1554_v26 = vmul.f32 %v2635_v24, %v1548_v25  ;;  %v2319_v27 = vpop.f32.mrb[25].mxu0 }
 0x6f9   : > { %v1551_v28 = vpop.f32.mrb[26].mxu0 }
 0x6fa   : > { %1556 = vrot.lane.b32.xlu1 %v1554_v26, %s3276_s18  ;;  %v2320_v29 = vpop.f32.mrb[27].mxu0  ;;  %s3133_s18 = sshll.u32 %s3277_s25, 4  ;;  %s3134_s18 = int_to_ptr.vmem [resolvable:$false] %s3133_s18 }
 0x6fb   : > { %s3135_s4 = scalar_lea.vmem %s3134_s18, 256  ;;  %p3136_p4 = scmp.lt.s32.totalorder %s4020_s22, %s3134_s18 }
 0x6fc   : > { %p3137_p3 = scmp.lt.s32.totalorder %s3135_s4, %s3129_s30 }
 0x6fe   : > { %p3138_p13 = por %p3137_p3, %p3136_p4 }
 0x700   : > { %p3139_p8 = pnand %p3138_p13, %p3132_p2 }
 0x75c   : > { %v1319_v30 = vpop.permute.xlu1 %1318 }
 0x75d   : > { %1322 = vst.msk [vmem:[#allocation2] sm:$0xff] %vm1321_vm5, %v1319_v30 }
 0x764   : > { %v1438_v31 = vpop.permute.xlu0 %1437 }
 0x765   : > { %1441 = vst.msk [vmem:[#allocation2] sm:$0xff] %vm1440_vm6, %v1438_v31 }
 0x76c   : > { %v1557_v32 = vpop.permute.xlu1 %1556 }
 0x76d   : > { %1560 = vst.msk [vmem:[#allocation2] sm:$0xff] %vm1559_vm7, %v1557_v32 }
 0x774   : > { %v1561_v33 = vld [vmem:[#allocation2] sm:$0xff] }
 0x775   : > { %v1562_v34 = vpack.c.bf16 %v1561_v33, %v1561_v33 }
 0x777   : > { %2326 = vmatmul.mubr.msk.bf16.vlgmr.msra.gmra.mrb[16].mxu1 %vm858_vm0, %v1562_v34 }
 0x778   : > { %2353 = vmatprep.mubr.msk.bf16.mxu1 %vm3270_vm1, %v3269_v8 }
 0x84a   : > { %v1623_v36 = vpop.f32.mrb[16].mxu1 }
 0x84b   : > { %v1624_v37 = vadd.f32 %v2186_v35, %v1623_v36  ;;  %v2327_v38 = vpop.f32.mrb[17].mxu1 }
 0x84c   : > { %v1626_v39 = vpop.f32.mrb[18].mxu1 }
 0x84d   : > { %v1629_v40 = vadd.f32 %v1624_v37, %v3900_v0  ;;  %v2328_v41 = vpop.f32.mrb[19].mxu1  ;;  %v2610_v0 = vld [vmem:[#allocation32] sm:$0xff]  }
 0x84e   : > { %2338 = vmatpush3.bf16.msra.mxu1 %v2610_v0 }
 0x84f   : > { %1630 = vst.msk [vmem:[#allocation3] sm:$0xff] %vm858_vm0, %v1629_v40  ;;  %v1633_v42 = vsel %vm858_vm0, %v1629_v40, 0.0  ;;  %2339 = vmatprep.subr.bf16.mxu1 %v3269_v8 }
 0x850   : > { %1634 = vadd.xlane.f32.xlu1 %v1633_v42 }
 0x852   : > { %2340 = vmatpush3.bf16.msra.mxu1 %v2611_v50 }
 0x853   : > { %2341 = vmatprep.subr.bf16.mxu1 %v3269_v8 }
 0x856   : > { %2342 = vmatpush3.bf16.msra.mxu1 %v2612_v51  ;;  %v1844_v19 = vld [vmem:[#allocation3] sm:$0xff] }
 0x857   : > { %2343 = vmatprep.subr.bf16.mxu1 %v3269_v8 }
 0x85a   : > { %2344 = vmatpush3.bf16.msra.mxu1 %v2613_v52 }
 0x85b   : > { %2345 = vmatprep.subr.bf16.mxu1 %v3269_v8 }
 0x85e   : > { %2346 = vmatpush3.bf16.msra.mxu1 %v2614_v53 }
 0x85f   : > { %2347 = vmatprep.subr.bf16.mxu1 %v3269_v8 }
 0x862   : > { %2348 = vmatpush3.bf16.msra.mxu1 %v2615_v54 }
 0x863   : > { %2349 = vmatprep.subr.bf16.mxu1 %v3269_v8 }
 0x866   : > { %2350 = vmatpush3.bf16.msra.mxu1 %v2616_v3 }
 0x867   : > { %2351 = vmatprep.subr.bf16.mxu1 %v3269_v8 }
 0x86a   : > { %2352 = vmatpush3.bf16.msra.mxu1 %v2617_v4 }
 0x8dd   : > { %v1635_v43 = vpop.xlane.xlu1 %1634 }
 0x8de   : > { %v1636_v44 = vmul.f32 0.03125, %v1635_v43 }
 0x8e0   : > { %v1637_v45 = vsub.f32 %v1629_v40, %v1636_v44 }
 0x8e2   : > { %v1638_v46 = vmul.f32 %v1637_v45, %v1637_v45 }
 0x8e4   : > { %v1639_v47 = vsel %vm858_vm0, %v1638_v46, 0.0 }
 0x8e5   : > { %1640 = vadd.xlane.f32.xlu0 %v1639_v47 }
 0x972   : > { %v1641_v55 = vpop.xlane.xlu0 %1640 }
 0x973   : > { %v1642_v56 = vmul.f32 0.03125, %v1641_v55 }
 0x975   : > { %v1643_v57 = vadd.f32 1e-05, %v1642_v56 }
 0x977   : > { %2636 = vrsqrt.f32 %v1643_v57 }
 0x981   : > { %v2637_v58 = vpop.eup %2636 }
 0x982   : > { %v1645_v60 = vmul.f32 %v2637_v58, %v1637_v45 }
 0x984   : > { %v1652_v62 = vmul.f32 %v2190_v59, %v1645_v60 }
 0x986   : > { %v1659_v63 = vadd.f32 %v2191_v61, %v1652_v62 }
 0x988   : > { %v1660_v1 = vpack.c.bf16 %v1659_v63, %v1659_v63 }
 0x98a   : > { %1662 = vst.msk [vmem:[#allocation4] sm:$0xf] %vm1661_vm8, %v1660_v1 }
 0x991   : > { %v1664_v2 = vld [vmem:[#allocation4] sm:$0xf] }
 0x992   : > { %2334 = vmatmul.mubr.msk.bf16.vlgmr.msra.gmra.mrb[28].mxu0 %vm858_vm0, %v1664_v2 }
 0xa65   : > { %v1726_v6 = vpop.f32.mrb[28].mxu0 }
 0xa66   : > { %v1727_v7 = vadd.f32 %v2192_v5, %v1726_v6  ;;  %v2335_v9 = vpop.f32.mrb[29].mxu0 }
 0xa67   : > { %v1729_v10 = vpop.f32.mrb[30].mxu0 }
 0xa68   : > { %v1732_v11 = vmax.f32 %v1727_v7, 0.0  ;;  %v2336_v12 = vpop.f32.mrb[31].mxu0 }
 0xa6a   : > { %v1734_v13 = vpack.c.bf16 %v1732_v11, %v1732_v11 }
 0xa6c   : > { %2354 = vmatmul.mubr.bf16.vlgmr.msra.gmra.mrb[20].mxu1 %v1734_v13 }
 0xb3f   : > { %v1833_v15 = vpop.f32.mrb[20].mxu1 }
 0xb40   : > { %v1839_v16 = vadd.f32 %v1833_v15, %v1733_v14  ;;  %v2355_v17 = vpop.f32.mrb[21].mxu1 }
 0xb41   : > { %v1836_v18 = vpop.f32.mrb[22].mxu1 }
 0xb42   : > { %1840 = vst.msk [vmem:[#allocation5] sm:$0xff] %vm858_vm0, %v1839_v16  ;;  %v2356_v8 = vpop.f32.mrb[23].mxu1 }
 0xb49   : > { %v1845_v20 = vld [vmem:[#allocation5] sm:$0xff] }
 0xb4a   : > { %v1846_v22 = vadd.f32 %v1845_v20, %v1844_v19 }
 0xb4c   : > { %v1854_v23 = vadd.f32 %v2204_v21, %v1846_v22 }
 0xb4e   : > { %1855 = vst.msk [vmem:[%s848_s27] sm:$0xff] %vm858_vm0, %v1854_v23 }
 0xb4f   : > { %3142 = shalt.err (!%p3139_p8)
}
 0xb50   : > { %s3143_s24 = scalar_lea.hbm %s4018_s26, 128  ;;  %s3147_s17 = scalar_lea.hbm %s4150_s2, 256 }
 0xb51   : > { %p3144_p7 = scmp.ne.s32.totalorder %s4018_s26, %s3143_s24  ;;  %p3148_p12 = scmp.lt.u32.totalorder %s4018_s26, %s4150_s2 }
 0xb52   : > { %p3149_p9 = scmp.lt.u32.totalorder %s3147_s17, %s3143_s24  ;;  %p3151_p6 = scmp.lt.u32.totalorder %s3143_s24, %s4018_s26 }
 0xb53   : > { %p3145_p10 = pnand %p3144_p7, %p4151_p1 }
 0xb54   : > { %p3150_p5 = por %p3149_p9, %p3148_p12 }
 0xb55   : > { %p3146_p11 = pneg %p3145_p10 }
 0xb56   : > { %p3152_p0 = por %p3151_p6, %p3150_p5 }
 0xb58   : > { %p3153_p2 = pnand %p3152_p0, %p3146_p11 }
 0xb5a   : > { %3156 = shalt.err (!%p3153_p2)
}
 0xb5b   : > { %2427 = dma.vmem_to_hbm [thread:$0]  (%p4151_p1), %s4020_s22, 128, %s4018_s26, %s1857_s23  }
 0xb5c PF: > { %s4152_s30 = sld [smem:[#allocation47_spill]]  ;;  %p4153_p4 = scmp.ne.s32.totalorder %s4141_s0, 0 }
 0xb5d   : > { %p4154_p3 = scmp.ge.s32.totalorder %s3247_s19, 2 }
 0xb5f   : > { %p2486_p13 = pnand %p4154_p3, %p4153_p4 }
 0xb62   : > { %s1882_s18 = sand.u32 1, %s4152_s30  }
 0xb63   : > { %s1883_s4 = scalar_lea.sflag [#allocation8], %s1882_s18 }
 0xb64   : > { %3222 = dma.done.wait (!%p2486_p13), %s1883_s4, 128  }
 0xb65   : > { %3224 = vsyncadd (!%p2486_p13), %s1883_s4, 4294967168  ;;  %s43_s19 = sadd.s32 1, %s3247_s19   ;;  %s4155_s27 = sld [smem:[#allocation48_spill]] }
 0xb66   : > { %p40_p8 = scmp.ge.s32.totalorder %s43_s19, 4   ;;  %s4156_s28 = sld [smem:[#allocation49_spill]] }
 0xb67   : > { %s4157_s30 = sld [smem:[#allocation51_spill]]  ;;  %s4158_s29 = smov %s3805_s1 }
 0xb68   : > { %s4159_s0 = smov %s4161_s21  ;;  %42 = sbr.rel (!%p40_p8) target bundleno = 24 (0x18), region = 217 }
 0xb6f   :  { %1888 = vsyncpa [#allocation7], 1 }
 0xb70   :  { %1890 = vsyncpa [#allocation7 + $0x1], 1 }
 0xb71   :  { %1891 = vsyncpa [#allocation12], 1 }
 0xb72   :  { %1892 = vsyncpa [#allocation15], 1 }
 0xb73   :  { %1893 = vsyncpa [#allocation18], 1 }
 0xb74   :  { %1894 = vsyncpa [#allocation21], 1 }
 0xb75   :  { %1895 = vsyncpa [#allocation24], 1 }
 0xb76   :  { %1896 = vsyncpa [#allocation27], 1 }
 0xb77   :  { %1897 = vsyncpa [#allocation30], 1 }
 0xb78   :  { %1898 = vsyncpa [#allocation33], 1 }
 0xb79   :  { %1899 = vsyncpa [#allocation8], 1 }
 0xb7a   :  { %1901 = vsyncpa [#allocation8 + $0x1], 1 }
 0xb7b   :  { %1902 = vsyncpa [#allocation9], 1 }
 0xb7c   :  { %1904 = vsyncpa [#allocation9 + $0x1], 1 }

</bundles_post_ra>
